<compile_context>
chip_gen: v7x
topology: tpu7x:2x2x1
jax: 0.10.0
libtpu: 0.0.40
codegen_flags: <defaults>
</compile_context>

<pallas_src>
import math

import jax
import jax.numpy as jnp
from jax.experimental import pallas as pl
from jax.experimental.pallas import tpu as pltpu

# ---------------- synthetic "MiniLM" config (small, deterministic) ----------
VOCAB = 100
MAX_POS = 16
HIDDEN = 32
NUM_HEADS = 2
HEAD_DIM = HIDDEN // NUM_HEADS
INTERMEDIATE = 64
NUM_LAYERS = 2
NUM_LABELS = 3
LOGIT_PAD = 128            # lane-dense classifier output width
LN_EPS = 1e-12
NEG_INF = -1e9


# ---------------- in-kernel math helpers (trace into the kernel body) -------
def _layer_norm(x, gamma, beta):
    mean = jnp.mean(x, axis=-1, keepdims=True)
    var = jnp.mean(jnp.square(x - mean), axis=-1, keepdims=True)
    return (x - mean) * jax.lax.rsqrt(var + LN_EPS) * gamma + beta


def _gelu(x):
    # TODO(synk): HF BERT/MiniLM uses exact erf-GELU; tanh approximation kept
    # here for guaranteed Mosaic lowering (EUP tanh slot).
    c = math.sqrt(2.0 / math.pi)
    return 0.5 * x * (1.0 + jnp.tanh(c * (x + 0.044715 * x * x * x)))


def _softmax(x):
    m = jnp.max(x, axis=-1, keepdims=True)
    e = jnp.exp(x - m)
    # Approximate reciprocal runs on the EUP slot -> frees VALU bandwidth.
    return e * pl.reciprocal(jnp.sum(e, axis=-1, keepdims=True), approx=True)


def _qkt(q, k):
    # q @ k.T as a single NT dot_general (no explicit transpose materialized).
    return jax.lax.dot_general(q, k, (((1,), (1,)), ((), ())),
                               preferred_element_type=jnp.float32)


# ---------------- single fused Pallas kernel --------------------------------
def fused_minilm_kernel(
    x_ref, bias_ref, sel_ref, emb_g_ref, emb_b_ref,
    wqkv_ref, bqkv_ref, wo_ref, bo_ref, ln1_g_ref, ln1_b_ref,
    w1_ref, b1_ref, w2_ref, b2_ref, ln2_g_ref, ln2_b_ref,
    wp_ref, bp_ref, wc_ref, bc_ref,
    o_ref,
):
    # Embedding LayerNorm, fused.
    x = _layer_norm(x_ref[...], emb_g_ref[...], emb_b_ref[...])        # [N, H] f32
    bias = bias_ref[...]                                               # [N, N] additive
    scale = 1.0 / math.sqrt(HEAD_DIM)

    # NUM_LAYERS == 2: static unroll is fine (see module TODO for deeper nets).
    for l in range(NUM_LAYERS):
        # Fused QKV: one 96-lane-wide matmul per layer.
        qkv = (jnp.dot(x.astype(jnp.bfloat16), wqkv_ref[l],
                       preferred_element_type=jnp.float32)
               + bqkv_ref[l])                                          # [N, 3H] f32
        wo = wo_ref[l]                                                 # [H, H] bf16
        attn = bo_ref[l]                                               # [1, H] broadcasts
        for h in range(NUM_HEADS):                                     # static, 2 iters
            lo = h * HEAD_DIM
            hi = lo + HEAD_DIM
            qh = qkv[:, lo:hi].astype(jnp.bfloat16)                    # [N, dH]
            kh = qkv[:, HIDDEN + lo:HIDDEN + hi].astype(jnp.bfloat16)  # [N, dH]
            vh = qkv[:, 2 * HIDDEN + lo:2 * HIDDEN + hi].astype(jnp.bfloat16)
            # Single 2-D score matmul; block-diagonal mask isolates batches.
            s = _qkt(qh, kh) * scale + bias                            # [N, N] f32
            p = _softmax(s)                                            # [N, N] f32
            ctx = jnp.dot(p.astype(jnp.bfloat16), vh,
                          preferred_element_type=jnp.float32)          # [N, dH]
            # Accumulate per-head output projection (no lane concatenation).
            attn = attn + jnp.dot(ctx.astype(jnp.bfloat16), wo[lo:hi, :],
                                  preferred_element_type=jnp.float32)
        h1 = _layer_norm(x + attn, ln1_g_ref[l], ln1_b_ref[l])

        ff = _gelu(jnp.dot(h1.astype(jnp.bfloat16), w1_ref[l],
                           preferred_element_type=jnp.float32) + b1_ref[l])
        ff = (jnp.dot(ff.astype(jnp.bfloat16), w2_ref[l],
                      preferred_element_type=jnp.float32) + b2_ref[l])
        x = _layer_norm(h1 + ff, ln2_g_ref[l], ln2_b_ref[l])

    # CLS pooling via a tiny selector matmul (rows beyond B are zero rows),
    # then pooler tanh + classifier on a full-sublane, lane-dense slab.
    cls = jnp.dot(sel_ref[...], x.astype(jnp.bfloat16),
                  preferred_element_type=jnp.float32)                  # [OUT_ROWS, H]
    pooled = jnp.tanh(jnp.dot(cls.astype(jnp.bfloat16), wp_ref[...],
                              preferred_element_type=jnp.float32) + bp_ref[...])
    # nn.Dropout(0.3) is identity at inference (eval mode) -> no-op here.
    o_ref[...] = (jnp.dot(pooled.astype(jnp.bfloat16), wc_ref[...],
                          preferred_element_type=jnp.float32)
                  + bc_ref[...])                                       # [OUT_ROWS, 128]


# ---------------- parameter init (deterministic, synthetic) ------------------
def init_params(seed=42):
    key = jax.random.PRNGKey(seed)

    def nxt():
        nonlocal key
        key, sub = jax.random.split(key)
        return sub

    def dense(fan_in, fan_out):
        w = 0.02 * jax.random.normal(nxt(), (fan_in, fan_out), jnp.float32)
        b = jnp.zeros((1, fan_out), jnp.float32)
        return w, b

    params = {
        "word_emb": 0.02 * jax.random.normal(nxt(), (VOCAB, HIDDEN), jnp.float32),
        "pos_emb": 0.02 * jax.random.normal(nxt(), (MAX_POS, HIDDEN), jnp.float32),
        "type_emb": 0.02 * jax.random.normal(nxt(), (2, HIDDEN), jnp.float32),
        "emb_ln_g": jnp.ones((1, HIDDEN), jnp.float32),
        "emb_ln_b": jnp.zeros((1, HIDDEN), jnp.float32),
    }

    layers = []
    for _ in range(NUM_LAYERS):
        wq, bq = dense(HIDDEN, HIDDEN)
        wk, bk = dense(HIDDEN, HIDDEN)
        wv, bv = dense(HIDDEN, HIDDEN)
        wo, bo = dense(HIDDEN, HIDDEN)
        w1, b1 = dense(HIDDEN, INTERMEDIATE)
        w2, b2 = dense(INTERMEDIATE, HIDDEN)
        layers.append({
            # Fused QKV weight/bias: one MXU push per layer instead of three.
            "wqkv": jnp.concatenate([wq, wk, wv], axis=1).astype(jnp.bfloat16),
            "bqkv": jnp.concatenate([bq, bk, bv], axis=1),             # f32
            "wo": wo.astype(jnp.bfloat16), "bo": bo,
            "ln1_g": jnp.ones((1, HIDDEN), jnp.float32),
            "ln1_b": jnp.zeros((1, HIDDEN), jnp.float32),
            "w_ff1": w1.astype(jnp.bfloat16), "b_ff1": b1,
            "w_ff2": w2.astype(jnp.bfloat16), "b_ff2": b2,
            "ln2_g": jnp.ones((1, HIDDEN), jnp.float32),
            "ln2_b": jnp.zeros((1, HIDDEN), jnp.float32),
        })
    # Stack per-layer params along a leading [NUM_LAYERS, ...] axis so the
    # fused kernel keeps every layer's weights resident and indexes ref[l].
    params["stacked_layers"] = {
        k: jnp.stack([lp[k] for lp in layers], axis=0) for k in layers[0]
    }

    wp, bp = dense(HIDDEN, HIDDEN)
    params["pooler_w"] = wp.astype(jnp.bfloat16)
    params["pooler_b"] = bp
    wc, bc = dense(HIDDEN, NUM_LABELS)
    # Zero-pad classifier to a lane-dense 128-wide output slab.
    params["cls_w_pad"] = (jnp.zeros((HIDDEN, LOGIT_PAD), jnp.float32)
                           .at[:, :NUM_LABELS].set(wc).astype(jnp.bfloat16))
    params["cls_b_pad"] = (jnp.zeros((1, LOGIT_PAD), jnp.float32)
                           .at[:, :NUM_LABELS].set(bc))
    return params


# ---------------- full forward (mirrors MultiLabelMiniLM.forward) ------------
def multilabel_minilm_forward(params, input_ids, attention_mask):
    B, S = input_ids.shape
    N = B * S
    out_rows = max(8, ((B + 7) // 8) * 8)       # full-sublane output slab

    # Embedding gathers are data-dependent -> plain JAX glue.
    we = params["word_emb"][input_ids]                          # [B, S, H]
    pe = params["pos_emb"][jnp.arange(S)][None, :, :]           # [1, S, H]
    te = params["type_emb"][0][None, None, :]                   # token_type_ids == 0
    x = (we + pe + te).astype(jnp.float32).reshape(N, HIDDEN)

    # One [N, N] additive attention bias: block-diagonal (isolates the batches
    # of the flattened [N, dH] attention) + key-padding mask.  Lets the kernel
    # run a single 2-D score matmul per head with no 3-D reshapes.
    batch_ids = jnp.arange(N) // S
    same_batch = batch_ids[:, None] == batch_ids[None, :]
    key_valid = attention_mask.reshape(N).astype(bool)
    attn_bias = jnp.where(same_batch & key_valid[None, :], 0.0,
                          NEG_INF).astype(jnp.float32)          # [N, N]

    # [out_rows, N] CLS row-selector: a tiny MXU dot replaces the 3-D reshape
    # + middle-axis gather and pads the output rows to a full sublane group.
    rows = jnp.arange(B)
    cls_sel = (jnp.zeros((out_rows, N), jnp.float32)
               .at[rows, rows * S].set(1.0).astype(jnp.bfloat16))

    sp = params["stacked_layers"]
    logits_pad = pl.pallas_call(
        fused_minilm_kernel,
        out_shape=jax.ShapeDtypeStruct((out_rows, LOGIT_PAD), jnp.float32),
        compiler_params=pltpu.CompilerParams(
            vmem_limit_bytes=32 * 1024 * 1024),
    )(
        x, attn_bias, cls_sel, params["emb_ln_g"], params["emb_ln_b"],
        sp["wqkv"], sp["bqkv"], sp["wo"], sp["bo"], sp["ln1_g"], sp["ln1_b"],
        sp["w_ff1"], sp["b_ff1"], sp["w_ff2"], sp["b_ff2"],
        sp["ln2_g"], sp["ln2_b"],
        params["pooler_w"], params["pooler_b"],
        params["cls_w_pad"], params["cls_b_pad"],
    )
    return logits_pad[:B, :NUM_LABELS]                          # [B, NUM_LABELS]


if __name__ == "__main__":
    B, S = 2, 8
    key = jax.random.PRNGKey(0)
    k_ids, _ = jax.random.split(key)
    input_ids = jax.random.randint(k_ids, (B, S), 0, VOCAB, dtype=jnp.int32)
    attention_mask = jnp.ones((B, S), jnp.int32)
    attention_mask = attention_mask.at[1, 6:].set(0)            # exercise masking

    params = init_params(seed=42)
    fwd = jax.jit(multilabel_minilm_forward)
    logits = fwd(params, input_ids, attention_mask)
    jax.block_until_ready(logits)
    assert logits.shape == (B, NUM_LABELS)
    assert bool(jnp.all(jnp.isfinite(logits)))
    print("KERNEL_OK")
</pallas_src>

<mosaic_0001>
module attributes {stable_mosaic.version = 11 : i64} {
  func.func @fused_minilm_kernel(%arg0: memref<16x32xf32, #tpu.memory_space<vmem>>, %arg1: memref<16x16xf32, #tpu.memory_space<vmem>>, %arg2: memref<8x16xbf16, #tpu.memory_space<vmem>>, %arg3: memref<1x32xf32, #tpu.memory_space<vmem>>, %arg4: memref<1x32xf32, #tpu.memory_space<vmem>>, %arg5: memref<2x32x96xbf16, #tpu.memory_space<vmem>>, %arg6: memref<2x1x96xf32, #tpu.memory_space<vmem>>, %arg7: memref<2x32x32xbf16, #tpu.memory_space<vmem>>, %arg8: memref<2x1x32xf32, #tpu.memory_space<vmem>>, %arg9: memref<2x1x32xf32, #tpu.memory_space<vmem>>, %arg10: memref<2x1x32xf32, #tpu.memory_space<vmem>>, %arg11: memref<2x32x64xbf16, #tpu.memory_space<vmem>>, %arg12: memref<2x1x64xf32, #tpu.memory_space<vmem>>, %arg13: memref<2x64x32xbf16, #tpu.memory_space<vmem>>, %arg14: memref<2x1x32xf32, #tpu.memory_space<vmem>>, %arg15: memref<2x1x32xf32, #tpu.memory_space<vmem>>, %arg16: memref<2x1x32xf32, #tpu.memory_space<vmem>>, %arg17: memref<32x32xbf16, #tpu.memory_space<vmem>>, %arg18: memref<1x32xf32, #tpu.memory_space<vmem>>, %arg19: memref<32x128xbf16, #tpu.memory_space<vmem>>, %arg20: memref<1x128xf32, #tpu.memory_space<vmem>>, %arg21: memref<8x128xf32, #tpu.memory_space<vmem>>) attributes {dimension_semantics = [], scalar_prefetch = 0 : i64, scratch_operands = 0 : i64, tpu.core_type = #tpu.core_type<tc>} {
    %c0 = arith.constant 0 : index
    %c0_0 = arith.constant 0 : index
    %0 = vector.load %arg0[%c0, %c0_0] : memref<16x32xf32, #tpu.memory_space<vmem>>, vector<16x32xf32>
    %c0_1 = arith.constant 0 : index
    %c0_2 = arith.constant 0 : index
    %1 = vector.load %arg3[%c0_1, %c0_2] : memref<1x32xf32, #tpu.memory_space<vmem>>, vector<1x32xf32>
    %c0_3 = arith.constant 0 : index
    %c0_4 = arith.constant 0 : index
    %2 = vector.load %arg4[%c0_3, %c0_4] : memref<1x32xf32, #tpu.memory_space<vmem>>, vector<1x32xf32>
    %cst = arith.constant dense<0.000000e+00> : vector<16xf32>
    %3 = vector.multi_reduction <add>, %0, %cst [1] : vector<16x32xf32> to vector<16xf32>
    %4 = vector.shape_cast %3 : vector<16xf32> to vector<16x1xf32>
    %cst_5 = arith.constant 3.200000e+01 : f32
    %5 = vector.broadcast %cst_5 : f32 to vector<16x1xf32>
    %6 = arith.divf %4, %5 : vector<16x1xf32>
    %7 = vector.broadcast %6 : vector<16x1xf32> to vector<16x32xf32>
    %8 = arith.subf %0, %7 : vector<16x32xf32>
    %9 = arith.mulf %8, %8 : vector<16x32xf32>
    %cst_6 = arith.constant dense<0.000000e+00> : vector<16xf32>
    %10 = vector.multi_reduction <add>, %9, %cst_6 [1] : vector<16x32xf32> to vector<16xf32>
    %11 = vector.shape_cast %10 : vector<16xf32> to vector<16x1xf32>
    %cst_7 = arith.constant 3.200000e+01 : f32
    %12 = vector.broadcast %cst_7 : f32 to vector<16x1xf32>
    %13 = arith.divf %11, %12 : vector<16x1xf32>
    %14 = vector.broadcast %6 : vector<16x1xf32> to vector<16x32xf32>
    %15 = arith.subf %0, %14 : vector<16x32xf32>
    %cst_8 = arith.constant 9.99999996E-13 : f32
    %16 = vector.broadcast %cst_8 : f32 to vector<16x1xf32>
    %17 = arith.addf %13, %16 : vector<16x1xf32>
    %18 = math.rsqrt %17 : vector<16x1xf32>
    %19 = vector.broadcast %18 : vector<16x1xf32> to vector<16x32xf32>
    %20 = arith.mulf %15, %19 : vector<16x32xf32>
    %21 = vector.broadcast %1 : vector<1x32xf32> to vector<16x32xf32>
    %22 = arith.mulf %20, %21 : vector<16x32xf32>
    %23 = vector.broadcast %2 : vector<1x32xf32> to vector<16x32xf32>
    %24 = arith.addf %22, %23 : vector<16x32xf32>
    %c0_9 = arith.constant 0 : index
    %c0_10 = arith.constant 0 : index
    %25 = vector.load %arg1[%c0_9, %c0_10] : memref<16x16xf32, #tpu.memory_space<vmem>>, vector<16x16xf32>
    %26 = arith.truncf %24 : vector<16x32xf32> to vector<16x32xbf16>
    %c0_11 = arith.constant 0 : index
    %c0_12 = arith.constant 0 : index
    %c0_13 = arith.constant 0 : index
    %27 = vector.load %arg5[%c0_11, %c0_12, %c0_13] : memref<2x32x96xbf16, #tpu.memory_space<vmem>>, vector<1x32x96xbf16>
    %28 = vector.shape_cast %27 : vector<1x32x96xbf16> to vector<32x96xbf16>
    %cst_14 = arith.constant dense<0.000000e+00> : vector<16x96xf32>
    %29 = tpu.matmul %26, %28, %cst_14 {dimension_numbers = #tpu.dot_dimension_numbers<[1], [0], [0], [1], [0, 0, 1, 1], [], []>} : vector<16x32xbf16>, vector<32x96xbf16>, vector<16x96xf32> -> vector<16x96xf32>
    %c0_15 = arith.constant 0 : index
    %c0_16 = arith.constant 0 : index
    %c0_17 = arith.constant 0 : index
    %30 = vector.load %arg6[%c0_15, %c0_16, %c0_17] : memref<2x1x96xf32, #tpu.memory_space<vmem>>, vector<1x1x96xf32>
    %31 = vector.shape_cast %30 : vector<1x1x96xf32> to vector<1x96xf32>
    %32 = vector.broadcast %31 : vector<1x96xf32> to vector<16x96xf32>
    %33 = arith.addf %29, %32 : vector<16x96xf32>
    %c0_18 = arith.constant 0 : index
    %c0_19 = arith.constant 0 : index
    %c0_20 = arith.constant 0 : index
    %34 = vector.load %arg7[%c0_18, %c0_19, %c0_20] : memref<2x32x32xbf16, #tpu.memory_space<vmem>>, vector<1x32x32xbf16>
    %35 = vector.shape_cast %34 : vector<1x32x32xbf16> to vector<32x32xbf16>
    %c0_21 = arith.constant 0 : index
    %c0_22 = arith.constant 0 : index
    %c0_23 = arith.constant 0 : index
    %36 = vector.load %arg8[%c0_21, %c0_22, %c0_23] : memref<2x1x32xf32, #tpu.memory_space<vmem>>, vector<1x1x32xf32>
    %37 = vector.shape_cast %36 : vector<1x1x32xf32> to vector<1x32xf32>
    %38 = vector.extract_strided_slice %33 {offsets = [0, 0], sizes = [16, 16], strides = [1, 1]} : vector<16x96xf32> to vector<16x16xf32>
    %39 = arith.truncf %38 : vector<16x16xf32> to vector<16x16xbf16>
    %40 = vector.extract_strided_slice %33 {offsets = [0, 32], sizes = [16, 16], strides = [1, 1]} : vector<16x96xf32> to vector<16x16xf32>
    %41 = arith.truncf %40 : vector<16x16xf32> to vector<16x16xbf16>
    %42 = vector.extract_strided_slice %33 {offsets = [0, 64], sizes = [16, 16], strides = [1, 1]} : vector<16x96xf32> to vector<16x16xf32>
    %43 = arith.truncf %42 : vector<16x16xf32> to vector<16x16xbf16>
    %cst_24 = arith.constant dense<0.000000e+00> : vector<16x16xf32>
    %44 = tpu.matmul %39, %41, %cst_24 {dimension_numbers = #tpu.dot_dimension_numbers<[1], [1], [0], [0], [0, 0, 1, 0], [], []>} : vector<16x16xbf16>, vector<16x16xbf16>, vector<16x16xf32> -> vector<16x16xf32>
    %cst_25 = arith.constant 2.500000e-01 : f32
    %45 = vector.broadcast %cst_25 : f32 to vector<16x16xf32>
    %46 = arith.mulf %44, %45 : vector<16x16xf32>
    %47 = arith.addf %46, %25 : vector<16x16xf32>
    %cst_26 = arith.constant dense<0xFF800000> : vector<16xf32>
    %48 = vector.multi_reduction <maximumf>, %47, %cst_26 [1] : vector<16x16xf32> to vector<16xf32>
    %49 = vector.shape_cast %48 : vector<16xf32> to vector<16x1xf32>
    %50 = vector.broadcast %49 : vector<16x1xf32> to vector<16x16xf32>
    %51 = arith.subf %47, %50 : vector<16x16xf32>
    %52 = math.exp %51 : vector<16x16xf32>
    %cst_27 = arith.constant dense<0.000000e+00> : vector<16xf32>
    %53 = vector.multi_reduction <add>, %52, %cst_27 [1] : vector<16x16xf32> to vector<16xf32>
    %54 = vector.shape_cast %53 : vector<16xf32> to vector<16x1xf32>
    %55 = tpu.reciprocal %54 {approx = true} : vector<16x1xf32> -> vector<16x1xf32>
    %56 = vector.broadcast %55 : vector<16x1xf32> to vector<16x16xf32>
    %57 = arith.mulf %52, %56 : vector<16x16xf32>
    %58 = arith.truncf %57 : vector<16x16xf32> to vector<16x16xbf16>
    %cst_28 = arith.constant dense<0.000000e+00> : vector<16x16xf32>
    %59 = tpu.matmul %58, %43, %cst_28 {dimension_numbers = #tpu.dot_dimension_numbers<[1], [0], [0], [1], [0, 0, 1, 1], [], []>} : vector<16x16xbf16>, vector<16x16xbf16>, vector<16x16xf32> -> vector<16x16xf32>
    %60 = arith.truncf %59 : vector<16x16xf32> to vector<16x16xbf16>
    %61 = vector.extract_strided_slice %35 {offsets = [0, 0], sizes = [16, 32], strides = [1, 1]} : vector<32x32xbf16> to vector<16x32xbf16>
    %cst_29 = arith.constant dense<0.000000e+00> : vector<16x32xf32>
    %62 = tpu.matmul %60, %61, %cst_29 {dimension_numbers = #tpu.dot_dimension_numbers<[1], [0], [0], [1], [0, 0, 1, 1], [], []>} : vector<16x16xbf16>, vector<16x32xbf16>, vector<16x32xf32> -> vector<16x32xf32>
    %63 = vector.broadcast %37 : vector<1x32xf32> to vector<16x32xf32>
    %64 = arith.addf %63, %62 : vector<16x32xf32>
    %65 = vector.extract_strided_slice %33 {offsets = [0, 16], sizes = [16, 16], strides = [1, 1]} : vector<16x96xf32> to vector<16x16xf32>
    %66 = arith.truncf %65 : vector<16x16xf32> to vector<16x16xbf16>
    %67 = vector.extract_strided_slice %33 {offsets = [0, 48], sizes = [16, 16], strides = [1, 1]} : vector<16x96xf32> to vector<16x16xf32>
    %68 = arith.truncf %67 : vector<16x16xf32> to vector<16x16xbf16>
    %69 = vector.extract_strided_slice %33 {offsets = [0, 80], sizes = [16, 16], strides = [1, 1]} : vector<16x96xf32> to vector<16x16xf32>
    %70 = arith.truncf %69 : vector<16x16xf32> to vector<16x16xbf16>
    %cst_30 = arith.constant dense<0.000000e+00> : vector<16x16xf32>
    %71 = tpu.matmul %66, %68, %cst_30 {dimension_numbers = #tpu.dot_dimension_numbers<[1], [1], [0], [0], [0, 0, 1, 0], [], []>} : vector<16x16xbf16>, vector<16x16xbf16>, vector<16x16xf32> -> vector<16x16xf32>
    %cst_31 = arith.constant 2.500000e-01 : f32
    %72 = vector.broadcast %cst_31 : f32 to vector<16x16xf32>
    %73 = arith.mulf %71, %72 : vector<16x16xf32>
    %74 = arith.addf %73, %25 : vector<16x16xf32>
    %cst_32 = arith.constant dense<0xFF800000> : vector<16xf32>
    %75 = vector.multi_reduction <maximumf>, %74, %cst_32 [1] : vector<16x16xf32> to vector<16xf32>
    %76 = vector.shape_cast %75 : vector<16xf32> to vector<16x1xf32>
    %77 = vector.broadcast %76 : vector<16x1xf32> to vector<16x16xf32>
    %78 = arith.subf %74, %77 : vector<16x16xf32>
    %79 = math.exp %78 : vector<16x16xf32>
    %cst_33 = arith.constant dense<0.000000e+00> : vector<16xf32>
    %80 = vector.multi_reduction <add>, %79, %cst_33 [1] : vector<16x16xf32> to vector<16xf32>
    %81 = vector.shape_cast %80 : vector<16xf32> to vector<16x1xf32>
    %82 = tpu.reciprocal %81 {approx = true} : vector<16x1xf32> -> vector<16x1xf32>
    %83 = vector.broadcast %82 : vector<16x1xf32> to vector<16x16xf32>
    %84 = arith.mulf %79, %83 : vector<16x16xf32>
    %85 = arith.truncf %84 : vector<16x16xf32> to vector<16x16xbf16>
    %cst_34 = arith.constant dense<0.000000e+00> : vector<16x16xf32>
    %86 = tpu.matmul %85, %70, %cst_34 {dimension_numbers = #tpu.dot_dimension_numbers<[1], [0], [0], [1], [0, 0, 1, 1], [], []>} : vector<16x16xbf16>, vector<16x16xbf16>, vector<16x16xf32> -> vector<16x16xf32>
    %87 = arith.truncf %86 : vector<16x16xf32> to vector<16x16xbf16>
    %88 = vector.extract_strided_slice %35 {offsets = [16, 0], sizes = [16, 32], strides = [1, 1]} : vector<32x32xbf16> to vector<16x32xbf16>
    %cst_35 = arith.constant dense<0.000000e+00> : vector<16x32xf32>
    %89 = tpu.matmul %87, %88, %cst_35 {dimension_numbers = #tpu.dot_dimension_numbers<[1], [0], [0], [1], [0, 0, 1, 1], [], []>} : vector<16x16xbf16>, vector<16x32xbf16>, vector<16x32xf32> -> vector<16x32xf32>
    %90 = arith.addf %64, %89 : vector<16x32xf32>
    %91 = arith.addf %24, %90 : vector<16x32xf32>
    %c0_36 = arith.constant 0 : index
    %c0_37 = arith.constant 0 : index
    %c0_38 = arith.constant 0 : index
    %92 = vector.load %arg9[%c0_36, %c0_37, %c0_38] : memref<2x1x32xf32, #tpu.memory_space<vmem>>, vector<1x1x32xf32>
    %93 = vector.shape_cast %92 : vector<1x1x32xf32> to vector<1x32xf32>
    %c0_39 = arith.constant 0 : index
    %c0_40 = arith.constant 0 : index
    %c0_41 = arith.constant 0 : index
    %94 = vector.load %arg10[%c0_39, %c0_40, %c0_41] : memref<2x1x32xf32, #tpu.memory_space<vmem>>, vector<1x1x32xf32>
    %95 = vector.shape_cast %94 : vector<1x1x32xf32> to vector<1x32xf32>
    %cst_42 = arith.constant dense<0.000000e+00> : vector<16xf32>
    %96 = vector.multi_reduction <add>, %91, %cst_42 [1] : vector<16x32xf32> to vector<16xf32>
    %97 = vector.shape_cast %96 : vector<16xf32> to vector<16x1xf32>
    %cst_43 = arith.constant 3.200000e+01 : f32
    %98 = vector.broadcast %cst_43 : f32 to vector<16x1xf32>
    %99 = arith.divf %97, %98 : vector<16x1xf32>
    %100 = vector.broadcast %99 : vector<16x1xf32> to vector<16x32xf32>
    %101 = arith.subf %91, %100 : vector<16x32xf32>
    %102 = arith.mulf %101, %101 : vector<16x32xf32>
    %cst_44 = arith.constant dense<0.000000e+00> : vector<16xf32>
    %103 = vector.multi_reduction <add>, %102, %cst_44 [1] : vector<16x32xf32> to vector<16xf32>
    %104 = vector.shape_cast %103 : vector<16xf32> to vector<16x1xf32>
    %cst_45 = arith.constant 3.200000e+01 : f32
    %105 = vector.broadcast %cst_45 : f32 to vector<16x1xf32>
    %106 = arith.divf %104, %105 : vector<16x1xf32>
    %107 = vector.broadcast %99 : vector<16x1xf32> to vector<16x32xf32>
    %108 = arith.subf %91, %107 : vector<16x32xf32>
    %cst_46 = arith.constant 9.99999996E-13 : f32
    %109 = vector.broadcast %cst_46 : f32 to vector<16x1xf32>
    %110 = arith.addf %106, %109 : vector<16x1xf32>
    %111 = math.rsqrt %110 : vector<16x1xf32>
    %112 = vector.broadcast %111 : vector<16x1xf32> to vector<16x32xf32>
    %113 = arith.mulf %108, %112 : vector<16x32xf32>
    %114 = vector.broadcast %93 : vector<1x32xf32> to vector<16x32xf32>
    %115 = arith.mulf %113, %114 : vector<16x32xf32>
    %116 = vector.broadcast %95 : vector<1x32xf32> to vector<16x32xf32>
    %117 = arith.addf %115, %116 : vector<16x32xf32>
    %118 = arith.truncf %117 : vector<16x32xf32> to vector<16x32xbf16>
    %c0_47 = arith.constant 0 : index
    %c0_48 = arith.constant 0 : index
    %c0_49 = arith.constant 0 : index
    %119 = vector.load %arg11[%c0_47, %c0_48, %c0_49] : memref<2x32x64xbf16, #tpu.memory_space<vmem>>, vector<1x32x64xbf16>
    %120 = vector.shape_cast %119 : vector<1x32x64xbf16> to vector<32x64xbf16>
    %cst_50 = arith.constant dense<0.000000e+00> : vector<16x64xf32>
    %121 = tpu.matmul %118, %120, %cst_50 {dimension_numbers = #tpu.dot_dimension_numbers<[1], [0], [0], [1], [0, 0, 1, 1], [], []>} : vector<16x32xbf16>, vector<32x64xbf16>, vector<16x64xf32> -> vector<16x64xf32>
    %c0_51 = arith.constant 0 : index
    %c0_52 = arith.constant 0 : index
    %c0_53 = arith.constant 0 : index
    %122 = vector.load %arg12[%c0_51, %c0_52, %c0_53] : memref<2x1x64xf32, #tpu.memory_space<vmem>>, vector<1x1x64xf32>
    %123 = vector.shape_cast %122 : vector<1x1x64xf32> to vector<1x64xf32>
    %124 = vector.broadcast %123 : vector<1x64xf32> to vector<16x64xf32>
    %125 = arith.addf %121, %124 : vector<16x64xf32>
    %cst_54 = arith.constant 5.000000e-01 : f32
    %126 = vector.broadcast %cst_54 : f32 to vector<16x64xf32>
    %127 = arith.mulf %126, %125 : vector<16x64xf32>
    %cst_55 = arith.constant 4.471500e-02 : f32
    %128 = vector.broadcast %cst_55 : f32 to vector<16x64xf32>
    %129 = arith.mulf %128, %125 : vector<16x64xf32>
    %130 = arith.mulf %129, %125 : vector<16x64xf32>
    %131 = arith.mulf %130, %125 : vector<16x64xf32>
    %132 = arith.addf %125, %131 : vector<16x64xf32>
    %cst_56 = arith.constant 0.797884583 : f32
    %133 = vector.broadcast %cst_56 : f32 to vector<16x64xf32>
    %134 = arith.mulf %133, %132 : vector<16x64xf32>
    %135 = math.tanh %134 : vector<16x64xf32>
    %cst_57 = arith.constant 1.000000e+00 : f32
    %136 = vector.broadcast %cst_57 : f32 to vector<16x64xf32>
    %137 = arith.addf %136, %135 : vector<16x64xf32>
    %138 = arith.mulf %127, %137 : vector<16x64xf32>
    %139 = arith.truncf %138 : vector<16x64xf32> to vector<16x64xbf16>
    %c0_58 = arith.constant 0 : index
    %c0_59 = arith.constant 0 : index
    %c0_60 = arith.constant 0 : index
    %140 = vector.load %arg13[%c0_58, %c0_59, %c0_60] : memref<2x64x32xbf16, #tpu.memory_space<vmem>>, vector<1x64x32xbf16>
    %141 = vector.shape_cast %140 : vector<1x64x32xbf16> to vector<64x32xbf16>
    %cst_61 = arith.constant dense<0.000000e+00> : vector<16x32xf32>
    %142 = tpu.matmul %139, %141, %cst_61 {dimension_numbers = #tpu.dot_dimension_numbers<[1], [0], [0], [1], [0, 0, 1, 1], [], []>} : vector<16x64xbf16>, vector<64x32xbf16>, vector<16x32xf32> -> vector<16x32xf32>
    %c0_62 = arith.constant 0 : index
    %c0_63 = arith.constant 0 : index
    %c0_64 = arith.constant 0 : index
    %143 = vector.load %arg14[%c0_62, %c0_63, %c0_64] : memref<2x1x32xf32, #tpu.memory_space<vmem>>, vector<1x1x32xf32>
    %144 = vector.shape_cast %143 : vector<1x1x32xf32> to vector<1x32xf32>
    %145 = vector.broadcast %144 : vector<1x32xf32> to vector<16x32xf32>
    %146 = arith.addf %142, %145 : vector<16x32xf32>
    %147 = arith.addf %117, %146 : vector<16x32xf32>
    %c0_65 = arith.constant 0 : index
    %c0_66 = arith.constant 0 : index
    %c0_67 = arith.constant 0 : index
    %148 = vector.load %arg15[%c0_65, %c0_66, %c0_67] : memref<2x1x32xf32, #tpu.memory_space<vmem>>, vector<1x1x32xf32>
    %149 = vector.shape_cast %148 : vector<1x1x32xf32> to vector<1x32xf32>
    %c0_68 = arith.constant 0 : index
    %c0_69 = arith.constant 0 : index
    %c0_70 = arith.constant 0 : index
    %150 = vector.load %arg16[%c0_68, %c0_69, %c0_70] : memref<2x1x32xf32, #tpu.memory_space<vmem>>, vector<1x1x32xf32>
    %151 = vector.shape_cast %150 : vector<1x1x32xf32> to vector<1x32xf32>
    %cst_71 = arith.constant dense<0.000000e+00> : vector<16xf32>
    %152 = vector.multi_reduction <add>, %147, %cst_71 [1] : vector<16x32xf32> to vector<16xf32>
    %153 = vector.shape_cast %152 : vector<16xf32> to vector<16x1xf32>
    %cst_72 = arith.constant 3.200000e+01 : f32
    %154 = vector.broadcast %cst_72 : f32 to vector<16x1xf32>
    %155 = arith.divf %153, %154 : vector<16x1xf32>
    %156 = vector.broadcast %155 : vector<16x1xf32> to vector<16x32xf32>
    %157 = arith.subf %147, %156 : vector<16x32xf32>
    %158 = arith.mulf %157, %157 : vector<16x32xf32>
    %cst_73 = arith.constant dense<0.000000e+00> : vector<16xf32>
    %159 = vector.multi_reduction <add>, %158, %cst_73 [1] : vector<16x32xf32> to vector<16xf32>
    %160 = vector.shape_cast %159 : vector<16xf32> to vector<16x1xf32>
    %cst_74 = arith.constant 3.200000e+01 : f32
    %161 = vector.broadcast %cst_74 : f32 to vector<16x1xf32>
    %162 = arith.divf %160, %161 : vector<16x1xf32>
    %163 = vector.broadcast %155 : vector<16x1xf32> to vector<16x32xf32>
    %164 = arith.subf %147, %163 : vector<16x32xf32>
    %cst_75 = arith.constant 9.99999996E-13 : f32
    %165 = vector.broadcast %cst_75 : f32 to vector<16x1xf32>
    %166 = arith.addf %162, %165 : vector<16x1xf32>
    %167 = math.rsqrt %166 : vector<16x1xf32>
    %168 = vector.broadcast %167 : vector<16x1xf32> to vector<16x32xf32>
    %169 = arith.mulf %164, %168 : vector<16x32xf32>
    %170 = vector.broadcast %149 : vector<1x32xf32> to vector<16x32xf32>
    %171 = arith.mulf %169, %170 : vector<16x32xf32>
    %172 = vector.broadcast %151 : vector<1x32xf32> to vector<16x32xf32>
    %173 = arith.addf %171, %172 : vector<16x32xf32>
    %174 = arith.truncf %173 : vector<16x32xf32> to vector<16x32xbf16>
    %c1 = arith.constant 1 : index
    %c0_76 = arith.constant 0 : index
    %c0_77 = arith.constant 0 : index
    %175 = vector.load %arg5[%c1, %c0_76, %c0_77] : memref<2x32x96xbf16, #tpu.memory_space<vmem>>, vector<1x32x96xbf16>
    %176 = vector.shape_cast %175 : vector<1x32x96xbf16> to vector<32x96xbf16>
    %cst_78 = arith.constant dense<0.000000e+00> : vector<16x96xf32>
    %177 = tpu.matmul %174, %176, %cst_78 {dimension_numbers = #tpu.dot_dimension_numbers<[1], [0], [0], [1], [0, 0, 1, 1], [], []>} : vector<16x32xbf16>, vector<32x96xbf16>, vector<16x96xf32> -> vector<16x96xf32>
    %c1_79 = arith.constant 1 : index
    %c0_80 = arith.constant 0 : index
    %c0_81 = arith.constant 0 : index
    %178 = vector.load %arg6[%c1_79, %c0_80, %c0_81] : memref<2x1x96xf32, #tpu.memory_space<vmem>>, vector<1x1x96xf32>
    %179 = vector.shape_cast %178 : vector<1x1x96xf32> to vector<1x96xf32>
    %180 = vector.broadcast %179 : vector<1x96xf32> to vector<16x96xf32>
    %181 = arith.addf %177, %180 : vector<16x96xf32>
    %c1_82 = arith.constant 1 : index
    %c0_83 = arith.constant 0 : index
    %c0_84 = arith.constant 0 : index
    %182 = vector.load %arg7[%c1_82, %c0_83, %c0_84] : memref<2x32x32xbf16, #tpu.memory_space<vmem>>, vector<1x32x32xbf16>
    %183 = vector.shape_cast %182 : vector<1x32x32xbf16> to vector<32x32xbf16>
    %c1_85 = arith.constant 1 : index
    %c0_86 = arith.constant 0 : index
    %c0_87 = arith.constant 0 : index
    %184 = vector.load %arg8[%c1_85, %c0_86, %c0_87] : memref<2x1x32xf32, #tpu.memory_space<vmem>>, vector<1x1x32xf32>
    %185 = vector.shape_cast %184 : vector<1x1x32xf32> to vector<1x32xf32>
    %186 = vector.extract_strided_slice %181 {offsets = [0, 0], sizes = [16, 16], strides = [1, 1]} : vector<16x96xf32> to vector<16x16xf32>
    %187 = arith.truncf %186 : vector<16x16xf32> to vector<16x16xbf16>
    %188 = vector.extract_strided_slice %181 {offsets = [0, 32], sizes = [16, 16], strides = [1, 1]} : vector<16x96xf32> to vector<16x16xf32>
    %189 = arith.truncf %188 : vector<16x16xf32> to vector<16x16xbf16>
    %190 = vector.extract_strided_slice %181 {offsets = [0, 64], sizes = [16, 16], strides = [1, 1]} : vector<16x96xf32> to vector<16x16xf32>
    %191 = arith.truncf %190 : vector<16x16xf32> to vector<16x16xbf16>
    %cst_88 = arith.constant dense<0.000000e+00> : vector<16x16xf32>
    %192 = tpu.matmul %187, %189, %cst_88 {dimension_numbers = #tpu.dot_dimension_numbers<[1], [1], [0], [0], [0, 0, 1, 0], [], []>} : vector<16x16xbf16>, vector<16x16xbf16>, vector<16x16xf32> -> vector<16x16xf32>
    %cst_89 = arith.constant 2.500000e-01 : f32
    %193 = vector.broadcast %cst_89 : f32 to vector<16x16xf32>
    %194 = arith.mulf %192, %193 : vector<16x16xf32>
    %195 = arith.addf %194, %25 : vector<16x16xf32>
    %cst_90 = arith.constant dense<0xFF800000> : vector<16xf32>
    %196 = vector.multi_reduction <maximumf>, %195, %cst_90 [1] : vector<16x16xf32> to vector<16xf32>
    %197 = vector.shape_cast %196 : vector<16xf32> to vector<16x1xf32>
    %198 = vector.broadcast %197 : vector<16x1xf32> to vector<16x16xf32>
    %199 = arith.subf %195, %198 : vector<16x16xf32>
    %200 = math.exp %199 : vector<16x16xf32>
    %cst_91 = arith.constant dense<0.000000e+00> : vector<16xf32>
    %201 = vector.multi_reduction <add>, %200, %cst_91 [1] : vector<16x16xf32> to vector<16xf32>
    %202 = vector.shape_cast %201 : vector<16xf32> to vector<16x1xf32>
    %203 = tpu.reciprocal %202 {approx = true} : vector<16x1xf32> -> vector<16x1xf32>
    %204 = vector.broadcast %203 : vector<16x1xf32> to vector<16x16xf32>
    %205 = arith.mulf %200, %204 : vector<16x16xf32>
    %206 = arith.truncf %205 : vector<16x16xf32> to vector<16x16xbf16>
    %cst_92 = arith.constant dense<0.000000e+00> : vector<16x16xf32>
    %207 = tpu.matmul %206, %191, %cst_92 {dimension_numbers = #tpu.dot_dimension_numbers<[1], [0], [0], [1], [0, 0, 1, 1], [], []>} : vector<16x16xbf16>, vector<16x16xbf16>, vector<16x16xf32> -> vector<16x16xf32>
    %208 = arith.truncf %207 : vector<16x16xf32> to vector<16x16xbf16>
    %209 = vector.extract_strided_slice %183 {offsets = [0, 0], sizes = [16, 32], strides = [1, 1]} : vector<32x32xbf16> to vector<16x32xbf16>
    %cst_93 = arith.constant dense<0.000000e+00> : vector<16x32xf32>
    %210 = tpu.matmul %208, %209, %cst_93 {dimension_numbers = #tpu.dot_dimension_numbers<[1], [0], [0], [1], [0, 0, 1, 1], [], []>} : vector<16x16xbf16>, vector<16x32xbf16>, vector<16x32xf32> -> vector<16x32xf32>
    %211 = vector.broadcast %185 : vector<1x32xf32> to vector<16x32xf32>
    %212 = arith.addf %211, %210 : vector<16x32xf32>
    %213 = vector.extract_strided_slice %181 {offsets = [0, 16], sizes = [16, 16], strides = [1, 1]} : vector<16x96xf32> to vector<16x16xf32>
    %214 = arith.truncf %213 : vector<16x16xf32> to vector<16x16xbf16>
    %215 = vector.extract_strided_slice %181 {offsets = [0, 48], sizes = [16, 16], strides = [1, 1]} : vector<16x96xf32> to vector<16x16xf32>
    %216 = arith.truncf %215 : vector<16x16xf32> to vector<16x16xbf16>
    %217 = vector.extract_strided_slice %181 {offsets = [0, 80], sizes = [16, 16], strides = [1, 1]} : vector<16x96xf32> to vector<16x16xf32>
    %218 = arith.truncf %217 : vector<16x16xf32> to vector<16x16xbf16>
    %cst_94 = arith.constant dense<0.000000e+00> : vector<16x16xf32>
    %219 = tpu.matmul %214, %216, %cst_94 {dimension_numbers = #tpu.dot_dimension_numbers<[1], [1], [0], [0], [0, 0, 1, 0], [], []>} : vector<16x16xbf16>, vector<16x16xbf16>, vector<16x16xf32> -> vector<16x16xf32>
    %cst_95 = arith.constant 2.500000e-01 : f32
    %220 = vector.broadcast %cst_95 : f32 to vector<16x16xf32>
    %221 = arith.mulf %219, %220 : vector<16x16xf32>
    %222 = arith.addf %221, %25 : vector<16x16xf32>
    %cst_96 = arith.constant dense<0xFF800000> : vector<16xf32>
    %223 = vector.multi_reduction <maximumf>, %222, %cst_96 [1] : vector<16x16xf32> to vector<16xf32>
    %224 = vector.shape_cast %223 : vector<16xf32> to vector<16x1xf32>
    %225 = vector.broadcast %224 : vector<16x1xf32> to vector<16x16xf32>
    %226 = arith.subf %222, %225 : vector<16x16xf32>
    %227 = math.exp %226 : vector<16x16xf32>
    %cst_97 = arith.constant dense<0.000000e+00> : vector<16xf32>
    %228 = vector.multi_reduction <add>, %227, %cst_97 [1] : vector<16x16xf32> to vector<16xf32>
    %229 = vector.shape_cast %228 : vector<16xf32> to vector<16x1xf32>
    %230 = tpu.reciprocal %229 {approx = true} : vector<16x1xf32> -> vector<16x1xf32>
    %231 = vector.broadcast %230 : vector<16x1xf32> to vector<16x16xf32>
    %232 = arith.mulf %227, %231 : vector<16x16xf32>
    %233 = arith.truncf %232 : vector<16x16xf32> to vector<16x16xbf16>
    %cst_98 = arith.constant dense<0.000000e+00> : vector<16x16xf32>
    %234 = tpu.matmul %233, %218, %cst_98 {dimension_numbers = #tpu.dot_dimension_numbers<[1], [0], [0], [1], [0, 0, 1, 1], [], []>} : vector<16x16xbf16>, vector<16x16xbf16>, vector<16x16xf32> -> vector<16x16xf32>
    %235 = arith.truncf %234 : vector<16x16xf32> to vector<16x16xbf16>
    %236 = vector.extract_strided_slice %183 {offsets = [16, 0], sizes = [16, 32], strides = [1, 1]} : vector<32x32xbf16> to vector<16x32xbf16>
    %cst_99 = arith.constant dense<0.000000e+00> : vector<16x32xf32>
    %237 = tpu.matmul %235, %236, %cst_99 {dimension_numbers = #tpu.dot_dimension_numbers<[1], [0], [0], [1], [0, 0, 1, 1], [], []>} : vector<16x16xbf16>, vector<16x32xbf16>, vector<16x32xf32> -> vector<16x32xf32>
    %238 = arith.addf %212, %237 : vector<16x32xf32>
    %239 = arith.addf %173, %238 : vector<16x32xf32>
    %c1_100 = arith.constant 1 : index
    %c0_101 = arith.constant 0 : index
    %c0_102 = arith.constant 0 : index
    %240 = vector.load %arg9[%c1_100, %c0_101, %c0_102] : memref<2x1x32xf32, #tpu.memory_space<vmem>>, vector<1x1x32xf32>
    %241 = vector.shape_cast %240 : vector<1x1x32xf32> to vector<1x32xf32>
    %c1_103 = arith.constant 1 : index
    %c0_104 = arith.constant 0 : index
    %c0_105 = arith.constant 0 : index
    %242 = vector.load %arg10[%c1_103, %c0_104, %c0_105] : memref<2x1x32xf32, #tpu.memory_space<vmem>>, vector<1x1x32xf32>
    %243 = vector.shape_cast %242 : vector<1x1x32xf32> to vector<1x32xf32>
    %cst_106 = arith.constant dense<0.000000e+00> : vector<16xf32>
    %244 = vector.multi_reduction <add>, %239, %cst_106 [1] : vector<16x32xf32> to vector<16xf32>
    %245 = vector.shape_cast %244 : vector<16xf32> to vector<16x1xf32>
    %cst_107 = arith.constant 3.200000e+01 : f32
    %246 = vector.broadcast %cst_107 : f32 to vector<16x1xf32>
    %247 = arith.divf %245, %246 : vector<16x1xf32>
    %248 = vector.broadcast %247 : vector<16x1xf32> to vector<16x32xf32>
    %249 = arith.subf %239, %248 : vector<16x32xf32>
    %250 = arith.mulf %249, %249 : vector<16x32xf32>
    %cst_108 = arith.constant dense<0.000000e+00> : vector<16xf32>
    %251 = vector.multi_reduction <add>, %250, %cst_108 [1] : vector<16x32xf32> to vector<16xf32>
    %252 = vector.shape_cast %251 : vector<16xf32> to vector<16x1xf32>
    %cst_109 = arith.constant 3.200000e+01 : f32
    %253 = vector.broadcast %cst_109 : f32 to vector<16x1xf32>
    %254 = arith.divf %252, %253 : vector<16x1xf32>
    %255 = vector.broadcast %247 : vector<16x1xf32> to vector<16x32xf32>
    %256 = arith.subf %239, %255 : vector<16x32xf32>
    %cst_110 = arith.constant 9.99999996E-13 : f32
    %257 = vector.broadcast %cst_110 : f32 to vector<16x1xf32>
    %258 = arith.addf %254, %257 : vector<16x1xf32>
    %259 = math.rsqrt %258 : vector<16x1xf32>
    %260 = vector.broadcast %259 : vector<16x1xf32> to vector<16x32xf32>
    %261 = arith.mulf %256, %260 : vector<16x32xf32>
    %262 = vector.broadcast %241 : vector<1x32xf32> to vector<16x32xf32>
    %263 = arith.mulf %261, %262 : vector<16x32xf32>
    %264 = vector.broadcast %243 : vector<1x32xf32> to vector<16x32xf32>
    %265 = arith.addf %263, %264 : vector<16x32xf32>
    %266 = arith.truncf %265 : vector<16x32xf32> to vector<16x32xbf16>
    %c1_111 = arith.constant 1 : index
    %c0_112 = arith.constant 0 : index
    %c0_113 = arith.constant 0 : index
    %267 = vector.load %arg11[%c1_111, %c0_112, %c0_113] : memref<2x32x64xbf16, #tpu.memory_space<vmem>>, vector<1x32x64xbf16>
    %268 = vector.shape_cast %267 : vector<1x32x64xbf16> to vector<32x64xbf16>
    %cst_114 = arith.constant dense<0.000000e+00> : vector<16x64xf32>
    %269 = tpu.matmul %266, %268, %cst_114 {dimension_numbers = #tpu.dot_dimension_numbers<[1], [0], [0], [1], [0, 0, 1, 1], [], []>} : vector<16x32xbf16>, vector<32x64xbf16>, vector<16x64xf32> -> vector<16x64xf32>
    %c1_115 = arith.constant 1 : index
    %c0_116 = arith.constant 0 : index
    %c0_117 = arith.constant 0 : index
    %270 = vector.load %arg12[%c1_115, %c0_116, %c0_117] : memref<2x1x64xf32, #tpu.memory_space<vmem>>, vector<1x1x64xf32>
    %271 = vector.shape_cast %270 : vector<1x1x64xf32> to vector<1x64xf32>
    %272 = vector.broadcast %271 : vector<1x64xf32> to vector<16x64xf32>
    %273 = arith.addf %269, %272 : vector<16x64xf32>
    %cst_118 = arith.constant 5.000000e-01 : f32
    %274 = vector.broadcast %cst_118 : f32 to vector<16x64xf32>
    %275 = arith.mulf %274, %273 : vector<16x64xf32>
    %cst_119 = arith.constant 4.471500e-02 : f32
    %276 = vector.broadcast %cst_119 : f32 to vector<16x64xf32>
    %277 = arith.mulf %276, %273 : vector<16x64xf32>
    %278 = arith.mulf %277, %273 : vector<16x64xf32>
    %279 = arith.mulf %278, %273 : vector<16x64xf32>
    %280 = arith.addf %273, %279 : vector<16x64xf32>
    %cst_120 = arith.constant 0.797884583 : f32
    %281 = vector.broadcast %cst_120 : f32 to vector<16x64xf32>
    %282 = arith.mulf %281, %280 : vector<16x64xf32>
    %283 = math.tanh %282 : vector<16x64xf32>
    %cst_121 = arith.constant 1.000000e+00 : f32
    %284 = vector.broadcast %cst_121 : f32 to vector<16x64xf32>
    %285 = arith.addf %284, %283 : vector<16x64xf32>
    %286 = arith.mulf %275, %285 : vector<16x64xf32>
    %287 = arith.truncf %286 : vector<16x64xf32> to vector<16x64xbf16>
    %c1_122 = arith.constant 1 : index
    %c0_123 = arith.constant 0 : index
    %c0_124 = arith.constant 0 : index
    %288 = vector.load %arg13[%c1_122, %c0_123, %c0_124] : memref<2x64x32xbf16, #tpu.memory_space<vmem>>, vector<1x64x32xbf16>
    %289 = vector.shape_cast %288 : vector<1x64x32xbf16> to vector<64x32xbf16>
    %cst_125 = arith.constant dense<0.000000e+00> : vector<16x32xf32>
    %290 = tpu.matmul %287, %289, %cst_125 {dimension_numbers = #tpu.dot_dimension_numbers<[1], [0], [0], [1], [0, 0, 1, 1], [], []>} : vector<16x64xbf16>, vector<64x32xbf16>, vector<16x32xf32> -> vector<16x32xf32>
    %c1_126 = arith.constant 1 : index
    %c0_127 = arith.constant 0 : index
    %c0_128 = arith.constant 0 : index
    %291 = vector.load %arg14[%c1_126, %c0_127, %c0_128] : memref<2x1x32xf32, #tpu.memory_space<vmem>>, vector<1x1x32xf32>
    %292 = vector.shape_cast %291 : vector<1x1x32xf32> to vector<1x32xf32>
    %293 = vector.broadcast %292 : vector<1x32xf32> to vector<16x32xf32>
    %294 = arith.addf %290, %293 : vector<16x32xf32>
    %295 = arith.addf %265, %294 : vector<16x32xf32>
    %c1_129 = arith.constant 1 : index
    %c0_130 = arith.constant 0 : index
    %c0_131 = arith.constant 0 : index
    %296 = vector.load %arg15[%c1_129, %c0_130, %c0_131] : memref<2x1x32xf32, #tpu.memory_space<vmem>>, vector<1x1x32xf32>
    %297 = vector.shape_cast %296 : vector<1x1x32xf32> to vector<1x32xf32>
    %c1_132 = arith.constant 1 : index
    %c0_133 = arith.constant 0 : index
    %c0_134 = arith.constant 0 : index
    %298 = vector.load %arg16[%c1_132, %c0_133, %c0_134] : memref<2x1x32xf32, #tpu.memory_space<vmem>>, vector<1x1x32xf32>
    %299 = vector.shape_cast %298 : vector<1x1x32xf32> to vector<1x32xf32>
    %cst_135 = arith.constant dense<0.000000e+00> : vector<16xf32>
    %300 = vector.multi_reduction <add>, %295, %cst_135 [1] : vector<16x32xf32> to vector<16xf32>
    %301 = vector.shape_cast %300 : vector<16xf32> to vector<16x1xf32>
    %cst_136 = arith.constant 3.200000e+01 : f32
    %302 = vector.broadcast %cst_136 : f32 to vector<16x1xf32>
    %303 = arith.divf %301, %302 : vector<16x1xf32>
    %304 = vector.broadcast %303 : vector<16x1xf32> to vector<16x32xf32>
    %305 = arith.subf %295, %304 : vector<16x32xf32>
    %306 = arith.mulf %305, %305 : vector<16x32xf32>
    %cst_137 = arith.constant dense<0.000000e+00> : vector<16xf32>
    %307 = vector.multi_reduction <add>, %306, %cst_137 [1] : vector<16x32xf32> to vector<16xf32>
    %308 = vector.shape_cast %307 : vector<16xf32> to vector<16x1xf32>
    %cst_138 = arith.constant 3.200000e+01 : f32
    %309 = vector.broadcast %cst_138 : f32 to vector<16x1xf32>
    %310 = arith.divf %308, %309 : vector<16x1xf32>
    %311 = vector.broadcast %303 : vector<16x1xf32> to vector<16x32xf32>
    %312 = arith.subf %295, %311 : vector<16x32xf32>
    %cst_139 = arith.constant 9.99999996E-13 : f32
    %313 = vector.broadcast %cst_139 : f32 to vector<16x1xf32>
    %314 = arith.addf %310, %313 : vector<16x1xf32>
    %315 = math.rsqrt %314 : vector<16x1xf32>
    %316 = vector.broadcast %315 : vector<16x1xf32> to vector<16x32xf32>
    %317 = arith.mulf %312, %316 : vector<16x32xf32>
    %318 = vector.broadcast %297 : vector<1x32xf32> to vector<16x32xf32>
    %319 = arith.mulf %317, %318 : vector<16x32xf32>
    %320 = vector.broadcast %299 : vector<1x32xf32> to vector<16x32xf32>
    %321 = arith.addf %319, %320 : vector<16x32xf32>
    %c0_140 = arith.constant 0 : index
    %c0_141 = arith.constant 0 : index
    %322 = vector.load %arg2[%c0_140, %c0_141] : memref<8x16xbf16, #tpu.memory_space<vmem>>, vector<8x16xbf16>
    %323 = arith.truncf %321 : vector<16x32xf32> to vector<16x32xbf16>
    %cst_142 = arith.constant dense<0.000000e+00> : vector<8x32xf32>
    %324 = tpu.matmul %322, %323, %cst_142 {dimension_numbers = #tpu.dot_dimension_numbers<[1], [0], [0], [1], [0, 0, 1, 1], [], []>} : vector<8x16xbf16>, vector<16x32xbf16>, vector<8x32xf32> -> vector<8x32xf32>
    %325 = arith.truncf %324 : vector<8x32xf32> to vector<8x32xbf16>
    %c0_143 = arith.constant 0 : index
    %c0_144 = arith.constant 0 : index
    %326 = vector.load %arg17[%c0_143, %c0_144] : memref<32x32xbf16, #tpu.memory_space<vmem>>, vector<32x32xbf16>
    %cst_145 = arith.constant dense<0.000000e+00> : vector<8x32xf32>
    %327 = tpu.matmul %325, %326, %cst_145 {dimension_numbers = #tpu.dot_dimension_numbers<[1], [0], [0], [1], [0, 0, 1, 1], [], []>} : vector<8x32xbf16>, vector<32x32xbf16>, vector<8x32xf32> -> vector<8x32xf32>
    %c0_146 = arith.constant 0 : index
    %c0_147 = arith.constant 0 : index
    %328 = vector.load %arg18[%c0_146, %c0_147] : memref<1x32xf32, #tpu.memory_space<vmem>>, vector<1x32xf32>
    %329 = vector.broadcast %328 : vector<1x32xf32> to vector<8x32xf32>
    %330 = arith.addf %327, %329 : vector<8x32xf32>
    %331 = math.tanh %330 : vector<8x32xf32>
    %332 = arith.truncf %331 : vector<8x32xf32> to vector<8x32xbf16>
    %c0_148 = arith.constant 0 : index
    %c0_149 = arith.constant 0 : index
    %333 = vector.load %arg19[%c0_148, %c0_149] : memref<32x128xbf16, #tpu.memory_space<vmem>>, vector<32x128xbf16>
    %cst_150 = arith.constant dense<0.000000e+00> : vector<8x128xf32>
    %334 = tpu.matmul %332, %333, %cst_150 {dimension_numbers = #tpu.dot_dimension_numbers<[1], [0], [0], [1], [0, 0, 1, 1], [], []>} : vector<8x32xbf16>, vector<32x128xbf16>, vector<8x128xf32> -> vector<8x128xf32>
    %c0_151 = arith.constant 0 : index
    %c0_152 = arith.constant 0 : index
    %335 = vector.load %arg20[%c0_151, %c0_152] : memref<1x128xf32, #tpu.memory_space<vmem>>, vector<1x128xf32>
    %336 = vector.broadcast %335 : vector<1x128xf32> to vector<8x128xf32>
    %337 = arith.addf %334, %336 : vector<8x128xf32>
    %c0_153 = arith.constant 0 : index
    %c0_154 = arith.constant 0 : index
    %338 = vector.load %arg21[%c0_153, %c0_154] : memref<8x128xf32, #tpu.memory_space<vmem>>, vector<8x128xf32>
    tpu.vector_store %arg21[%c0_153, %c0_154], %337 {strides = array<i32>} : memref<8x128xf32, #tpu.memory_space<vmem>>, vector<8x128xf32>,
    return
  }
}

</mosaic_0001>

<bundles_post_ra>
// kernel: multilabel_minilm_forward.1
= control target key start
LH: loop header
LB: loop body
LE: loop exit
PB: predicated region body
PF: predicated region fallthrough
CT: control target
= control target key end

     0   :  { %vm73_vm0 = vcmask 261120   ;;  %v2102_v15 = vmov 0.0   ;;  %vm2103_vm1 = vmmov 0   ;;  %s2105_s28 = smov 80   ;;  %s2106_s29 = smov 112   ;;  %vm196_vm2 = vcmask 130048   ;;  %s2559_s0 = inlined_call_operand.vmem [shape: f32[16,32], index: 0, kind: input, shape index: {}]   ;;  %s2560_s5 = inlined_call_operand.vmem [shape: bf16[2,32,96], index: 5, kind: input, shape index: {}]   ;;  %s2561_s3 = inlined_call_operand.vmem [shape: f32[1,32], index: 3, kind: input, shape index: {}]   ;;  %s2562_s4 = inlined_call_operand.vmem [shape: f32[1,32], index: 4, kind: input, shape index: {}]   ;;  %s2563_s6 = inlined_call_operand.vmem [shape: f32[2,1,96], index: 6, kind: input, shape index: {}]   ;;  %s2564_s1 = inlined_call_operand.vmem [shape: f32[16,16], index: 1, kind: input, shape index: {}]   ;;  %s2565_s7 = inlined_call_operand.vmem [shape: bf16[2,32,32], index: 7, kind: input, shape index: {}]   ;;  %s2566_s8 = inlined_call_operand.vmem [shape: f32[2,1,32], index: 8, kind: input, shape index: {}]   ;;  %s2567_s11 = inlined_call_operand.vmem [shape: bf16[2,32,64], index: 11, kind: input, shape index: {}]   ;;  %s2568_s9 = inlined_call_operand.vmem [shape: f32[2,1,32], index: 9, kind: input, shape index: {}]   ;;  %s2569_s10 = inlined_call_operand.vmem [shape: f32[2,1,32], index: 10, kind: input, shape index: {}]   ;;  %s2570_s13 = inlined_call_operand.vmem [shape: bf16[2,64,32], index: 13, kind: input, shape index: {}]   ;;  %s2571_s12 = inlined_call_operand.vmem [shape: f32[2,1,64], index: 12, kind: input, shape index: {}]   ;;  %s2572_s14 = inlined_call_operand.vmem [shape: f32[2,1,32], index: 14, kind: input, shape index: {}]   ;;  %s2573_s15 = inlined_call_operand.vmem [shape: f32[2,1,32], index: 15, kind: input, shape index: {}]   ;;  %s2574_s16 = inlined_call_operand.vmem [shape: f32[2,1,32], index: 16, kind: input, shape index: {}]   ;;  %s2575_s17 = inlined_call_operand.vmem [shape: bf16[32,32], index: 17, kind: input, shape index: {}]   ;;  %s2576_s2 = inlined_call_operand.vmem [shape: bf16[8,16], index: 2, kind: input, shape index: {}]   ;;  %s2577_s19 = inlined_call_operand.vmem [shape: bf16[32,128], index: 19, kind: input, shape index: {}]   ;;  %s2578_s18 = inlined_call_operand.vmem [shape: f32[1,32], index: 18, kind: input, shape index: {}]   ;;  %s2579_s20 = inlined_call_operand.vmem [shape: f32[1,128], index: 20, kind: input, shape index: {}]   ;;  %s2580_s21 = inlined_call_operand.vmem [shape: f32[8,128], index: 21, kind: output, shape index: {}]  }
   0x1   :  { %2585 = sst [smem:[#allocation2_spill]] %s2559_s0  ;;  %1859 = vmatprep.subr.bf16.mxu0 %v2102_v15  ;;  %1867 = vmatprep.subr.bf16.mxu1 %v2102_v15  ;;  %s2108_s25 = smov 48   ;;  %vm727_vm3 = vcmask 523264  }
   0x2   :  { %2586 = sst [smem:[#allocation3_spill]] %s2560_s5  ;;  %s2591_s26 = sld [smem:[#allocation2_spill]]  ;;  %1863 = vmatprep.mubr.msk.bf16.mxu0 %vm2103_vm1, %v2102_v15  ;;  %1869 = vmatprep.mubr.msk.bf16.mxu1 %vm2103_vm1, %v2102_v15 }
   0x3   :  { %2587 = sst [smem:[#allocation4_spill]] %s2561_s3  ;;  %s2592_s0 = sld [smem:[#allocation3_spill]] }
   0x4   :  { %2588 = sst [smem:[#allocation5_spill]] %s2562_s4  ;;  %s2593_s23 = sld [smem:[#allocation4_spill]] }
   0x5   :  { %2589 = sst [smem:[#allocation6_spill]] %s2563_s6  ;;  %s2594_s3 = sld [smem:[#allocation5_spill]] }
   0x6   :  { %2590 = sst [smem:[#allocation7_spill]] %s2564_s1  ;;  %s2595_s27 = sld [smem:[#allocation6_spill]] }
   0x7   :  { %s2104_s4 = smov 96   ;;  %s2596_s1 = sld [smem:[#allocation7_spill]] }
   0x8   :  { %v69_v0 = vld [vmem:[%s2591_s26] sm:$0xff]  ;;  %v70_v1 = vld [vmem:[%s2591_s26 + $0x8] sm:$0xff]  ;;  %s2107_s5 = smov 64  }
   0x9   :  { %v74_v2 = vsel %vm73_vm0, %v69_v0, 0.0  ;;  %v77_v3 = vsel %vm73_vm0, %v70_v1, 0.0  ;;  %v2016_v14 = vld [vmem:[%s2592_s0] sm:$0xff]   ;;  %v2017_v16 = vld [vmem:[%s2592_s0 + $0x8] sm:$0xff]  }
   0xa   :  { %75 = vadd.xlane.f32.xlu0 %v74_v2  ;;  %1860 = vmatpush3.bf16.msra.mxu0 %v2016_v14  ;;  %v1712_v25 = vld [vmem:[%s2593_s23] ss:$0 sm:$0xff] }
   0xb   :  { %1861 = vmatprep.subr.bf16.mxu0 %v2102_v15  ;;  %v1713_v29 = vld [vmem:[%s2594_s3] ss:$0 sm:$0xff] }
   0xc   :  { %v1714_v34 = vld [vmem:[%s2595_s27] ss:$0 sm:$0xff] }
   0xd   :  { %v2278_v45 = vld [vmem:[%s2596_s1] sm:$0xff]  ;;  %v2283_v49 = vld [vmem:[%s2596_s1 + $0x8] sm:$0xff] }
   0xe   :  { %78 = vadd.xlane.f32.xlu0 %v77_v3  ;;  %1862 = vmatpush3.bf16.msra.mxu0 %v2017_v16 }
   0xf   :  { %1873 = vmatprep.subr.bf16.mxu0 %v2102_v15 }
  0x97   :  { %v76_v4 = vpop.xlane.xlu0 %75 }
  0x98   :  { %v81_v5 = vmul.f32 0.03125, %v76_v4 }
  0x9a   :  { %v83_v6 = vsub.f32 %v69_v0, %v81_v5 }
  0x9b   :  { %v79_v7 = vpop.xlane.xlu0 %78 }
  0x9c   :  { %v82_v8 = vmul.f32 0.03125, %v79_v7  ;;  %v85_v9 = vmul.f32 %v83_v6, %v83_v6 }
  0x9e   :  { %v84_v10 = vsub.f32 %v70_v1, %v82_v8  ;;  %v87_v11 = vsel %vm73_vm0, %v85_v9, 0.0 }
  0x9f   :  { %88 = vadd.xlane.f32.xlu1 %v87_v11 }
  0xa0   :  { %v86_v12 = vmul.f32 %v84_v10, %v84_v10 }
  0xa2   :  { %v90_v13 = vsel %vm73_vm0, %v86_v12, 0.0 }
  0xa3   :  { %91 = vadd.xlane.f32.xlu1 %v90_v13  ;;  %v2018_v13 = vld [vmem:[%s2565_s7] sm:$0xff]  }
 0x12c   :  { %v89_v17 = vpop.xlane.xlu1 %88 }
 0x12d   :  { %v93_v18 = vmul.f32 0.03125, %v89_v17 }
 0x12f   :  { %v95_v19 = vadd.f32 1e-12, %v93_v18 }
 0x130   :  { %v92_v20 = vpop.xlane.xlu1 %91 }
 0x131   :  { %2040 = vrsqrt.f32 %v95_v19  ;;  %v94_v21 = vmul.f32 0.03125, %v92_v20 }
 0x133   :  { %v96_v22 = vadd.f32 1e-12, %v94_v21 }
 0x135   :  { %2042 = vrsqrt.f32 %v96_v22 }
 0x13b   :  { %v2041_v23 = vpop.eup %2040 }
 0x13c   :  { %v99_v24 = vmul.f32 %v2041_v23, %v83_v6 }
 0x13e   :  { %v107_v28 = vmul.f32 %v1712_v25, %v99_v24 }
 0x13f   :  { %v2043_v26 = vpop.eup %2042 }
 0x140   :  { %v100_v27 = vmul.f32 %v2043_v26, %v84_v10  ;;  %v2249_v31 = vadd.f32 %v1713_v29, %v107_v28 }
 0x142   :  { %v108_v30 = vmul.f32 %v1712_v25, %v100_v27 }
 0x144   :  { %v2251_v32 = vadd.f32 %v1713_v29, %v108_v30 }
 0x146   :  { %v119_v33 = vpack.c.bf16 %v2251_v32, %v2249_v31 }
 0x148   :  { %1864 = vmatmul.mubr.msk.bf16.vlgmr.msra.gmra.mrb[0].mxu0 %vm73_vm0, %v119_v33 }
 0x149   :  { %1875 = vmatprep.mubr.msk.bf16.mxu0 %vm2103_vm1, %v2102_v15 }
 0x21b   :  { %v180_v35 = vpop.f32.mrb[0].mxu0 }
 0x21c   :  { %v1865_v36 = vpop.f32.mrb[1].mxu0  ;;  %v181_v38 = vadd.f32 %v1714_v34, %v180_v35 }
 0x21d   :  { %v183_v37 = vpop.f32.mrb[2].mxu0 }
 0x21e   :  { %v184_v39 = vadd.f32 %v1714_v34, %v183_v37  ;;  %v1866_v40 = vpop.f32.mrb[3].mxu0 }
 0x220   :  { %v2261_v41 = vpack.c.bf16 %v184_v39, %v181_v38 }
 0x222   :  { %194 = vrot.lane.b32.xlu0 %v2261_v41, %s2104_s4 }
 0x226   :  { %379 = vrot.lane.b32.xlu0 %v2261_v41, %s2105_s28 }
 0x22a   :  { %377 = vrot.lane.b32.xlu0 %v2261_v41, %s2106_s29 }
 0x294   :  { %v195_v42 = vpop.permute.xlu0 %194 }
 0x295   :  { %v201_v43 = vsel %vm196_vm2, %v195_v42, 0 }
 0x296   :  { %1868 = vmatpush3.bf16.xpose.msra.mxu1 %v201_v43 }
 0x297   :  { %1879 = vmatprep.subr.bf16.mxu1 %v2102_v15 }
 0x298   :  { %v380_v9 = vpop.permute.xlu0 %379 }
 0x299   :  { %v385_v11 = vsel %vm196_vm2, %v380_v9, 0 }
 0x29c   :  { %v378_v12 = vpop.permute.xlu0 %377 }
 0x29d   :  { %1870 = vmatmul.mubr.msk.bf16.vlgmr.msra.gmra.mrb[0].mxu1 %vm196_vm2, %v2261_v41 }
 0x29e   :  { %1881 = vmatprep.mubr.msk.bf16.mxu1 %vm2103_vm1, %v2102_v15  ;;  %1880 = vmatpush3.bf16.msra.mxu1 %v2018_v13 }
 0x29f   :  { %1891 = vmatprep.subr.bf16.mxu1 %v2102_v15 }
 0x370   :  { %v237_v44 = vpop.f32.mrb[0].mxu1 }
 0x371   :  { %v244_v46 = vmul.f32 0.25, %v237_v44  ;;  %v1871_v47 = vpop.f32.mrb[1].mxu1 }
 0x372   :  { %v240_v48 = vpop.f32.mrb[2].mxu1 }
 0x373   :  { %v245_v50 = vmul.f32 0.25, %v240_v48  ;;  %v1872_v51 = vpop.f32.mrb[3].mxu1  ;;  %v246_v52 = vadd.f32 %v244_v46, %v2278_v45 }
 0x375   :  { %v248_v53 = vsel %vm196_vm2, %v246_v52, -inf  ;;  %v247_v54 = vadd.f32 %v245_v50, %v2283_v49 }
 0x376   :  { %249 = vmax.xlane.f32.xlu1 %v248_v53 }
 0x377   :  { %v251_v55 = vsel %vm196_vm2, %v247_v54, -inf }
 0x37a   :  { %252 = vmax.xlane.f32.xlu1 %v251_v55 }
 0x403   :  { %v250_v56 = vpop.xlane.xlu1 %249 }
 0x404   :  { %v254_v57 = vsub.f32 %v246_v52, %v250_v56 }
 0x406   :  { %v256_v58 = vmul.f32 1.442695, %v254_v57 }
 0x407   :  { %v253_v59 = vpop.xlane.xlu1 %252 }
 0x408   :  { %2044 = vpow2.f32 %v256_v58  ;;  %v255_v60 = vsub.f32 %v247_v54, %v253_v59 }
 0x40a   :  { %v258_v61 = vmul.f32 1.442695, %v255_v60 }
 0x40c   :  { %2046 = vpow2.f32 %v258_v61 }
 0x412   :  { %v2045_v62 = vpop.eup %2044 }
 0x413   :  { %v260_v63 = vsel %vm196_vm2, %v2045_v62, 0.0 }
 0x414   :  { %261 = vadd.xlane.f32.xlu1 %v260_v63 }
 0x416   :  { %v2047_v0 = vpop.eup %2046 }
 0x417   :  { %v263_v1 = vsel %vm196_vm2, %v2047_v0, 0.0 }
 0x418   :  { %264 = vadd.xlane.f32.xlu1 %v263_v1 }
 0x429   :  { %271 = vrot.lane.b32.xlu1 %v2261_v41, %s2107_s5 }
 0x4a1   :  { %v262_v2 = vpop.xlane.xlu1 %261 }
 0x4a2   :  { %2048 = vrcp.f32 %v262_v2 }
 0x4a5   :  { %v265_v3 = vpop.xlane.xlu1 %264 }
 0x4a6   :  { %2050 = vrcp.f32 %v265_v3 }
 0x4a9   :  { %v272_v4 = vpop.permute.xlu1 %271 }
 0x4aa   :  { %1874 = vmatpush3.bf16.msra.mxu0 %v272_v4 }
 0x4ab   :  { %1885 = vmatprep.subr.bf16.mxu0 %v2102_v15 }
 0x4ac   :  { %v2049_v5 = vpop.eup %2048 }
 0x4ad   :  { %v268_v7 = vmul.f32 %v2049_v5, %v2045_v62  ;;  %v1722_v62 = vld [vmem:[%s2566_s8] ss:$0 sm:$0xff] }
 0x4b0   :  { %v2051_v6 = vpop.eup %2050 }
 0x4b1   :  { %v269_v8 = vmul.f32 %v2051_v6, %v2047_v0 }
 0x4b3   :  { %v270_v10 = vpack.c.bf16 %v269_v8, %v268_v7 }
 0x4b5   :  { %1876 = vmatmul.mubr.msk.bf16.vlgmr.msra.gmra.mrb[4].mxu0 %vm196_vm2, %v270_v10 }
 0x4b6   :  { %1886 = vmatpush3.bf16.xpose.msra.mxu0 %v385_v11  ;;  %1887 = vmatprep.mubr.msk.bf16.mxu0 %vm2103_vm1, %v2102_v15 }
 0x4b7   :  { %1897 = vmatprep.subr.bf16.mxu0 %v2102_v15 }
 0x4bd   :  { %1888 = vmatmul.mubr.msk.bf16.vlgmr.msra.gmra.mrb[8].mxu0 %vm196_vm2, %v378_v12 }
 0x4be   :  { %1899 = vmatprep.mubr.msk.bf16.mxu0 %vm2103_vm1, %v2102_v15 }
 0x588   :  { %v311_v14 = vpop.f32.mrb[4].mxu0 }
 0x589   :  { %v1877_v16 = vpop.f32.mrb[5].mxu0 }
 0x58a   :  { %v314_v17 = vpop.f32.mrb[6].mxu0 }
 0x58b   :  { %v318_v18 = vpack.c.bf16 %v314_v17, %v311_v14  ;;  %v1878_v19 = vpop.f32.mrb[7].mxu0 }
 0x58d   :  { %1882 = vmatmul.mubr.msk.bf16.vlgmr.msra.gmra.mrb[4].mxu1 %vm196_vm2, %v318_v18 }
 0x58e   :  { %1893 = vmatprep.mubr.msk.bf16.mxu1 %vm2103_vm1, %v2102_v15 }
 0x590   :  { %v421_v20 = vpop.f32.mrb[8].mxu0 }
 0x591   :  { %v428_v21 = vmul.f32 0.25, %v421_v20  ;;  %v1889_v22 = vpop.f32.mrb[9].mxu0 }
 0x592   :  { %v424_v23 = vpop.f32.mrb[10].mxu0 }
 0x593   :  { %v429_v24 = vmul.f32 0.25, %v424_v23  ;;  %v1890_v25 = vpop.f32.mrb[11].mxu0  ;;  %v430_v26 = vadd.f32 %v428_v21, %v2278_v45  ;;  %v2021_v21 = vld [vmem:[%s2567_s11 + $0x8] sm:$0xff]  }
 0x595   :  { %v432_v27 = vsel %vm196_vm2, %v430_v26, -inf  ;;  %v431_v28 = vadd.f32 %v429_v24, %v2283_v49 }
 0x596   :  { %433 = vmax.xlane.f32.xlu0 %v432_v27 }
 0x597   :  { %v435_v29 = vsel %vm196_vm2, %v431_v28, -inf }
 0x598   :  { %436 = vmax.xlane.f32.xlu1 %v435_v29 }
 0x623   :  { %v434_v30 = vpop.xlane.xlu0 %433 }
 0x624   :  { %v438_v33 = vsub.f32 %v430_v26, %v434_v30  ;;  %v1727_v30 = vld [vmem:[%s2568_s9] ss:$0 sm:$0xff] }
 0x625   :  { %v437_v34 = vpop.xlane.xlu1 %436 }
 0x626   :  { %v440_v35 = vmul.f32 1.442695, %v438_v33  ;;  %v439_v36 = vsub.f32 %v431_v28, %v437_v34 }
 0x628   :  { %2052 = vpow2.f32 %v440_v35  ;;  %v442_v37 = vmul.f32 1.442695, %v439_v36  ;;  %v1728_v36 = vld [vmem:[%s2569_s10] ss:$0 sm:$0xff] }
 0x62a   :  { %2054 = vpow2.f32 %v442_v37 }
 0x632   :  { %v2053_v38 = vpop.eup %2052 }
 0x633   :  { %v444_v39 = vsel %vm196_vm2, %v2053_v38, 0.0 }
 0x634   :  { %v2055_v40 = vpop.eup %2054  ;;  %445 = vadd.xlane.f32.xlu0 %v444_v39 }
 0x635   :  { %v447_v42 = vsel %vm196_vm2, %v2055_v40, 0.0 }
 0x638   :  { %448 = vadd.xlane.f32.xlu0 %v447_v42  ;;  %v2022_v42 = vld [vmem:[%s2570_s13] sm:$0xff]  }
 0x64e   :  { %455 = vrot.lane.b32.xlu0 %v2261_v41, %s2108_s25  ;;  %v2019_v41 = vld [vmem:[%s2565_s7 + $0x8] sm:$0xff]  }
 0x64f   :  { %1898 = vmatpush3.bf16.msra.mxu0 %v2019_v41 }
 0x650   :  { %1911 = vmatprep.subr.bf16.mxu0 %v2102_v15 }
 0x660   :  { %v362_v43 = vpop.f32.mrb[4].mxu1 }
 0x661   :  { %v1883_v44 = vpop.f32.mrb[5].mxu1  ;;  %v375_v63 = vadd.f32 %v1722_v62, %v362_v43  ;;  %v2023_v43 = vld [vmem:[%s2570_s13 + $0x8] sm:$0xff]  }
 0x662   :  { %v365_v46 = vpop.f32.mrb[6].mxu1  ;;  %v2024_v44 = vld [vmem:[%s2570_s13 + $0x10] sm:$0xff]  }
 0x663   :  { %v1884_v47 = vpop.f32.mrb[7].mxu1  ;;  %v376_v1 = vadd.f32 %v1722_v62, %v365_v46  ;;  %v2025_v46 = vld [vmem:[%s2570_s13 + $0x18] sm:$0xff]  }
 0x664   :  { %v1729_v47 = vld [vmem:[%s2571_s12] ss:$0 sm:$0xff] }
 0x6c1   :  { %v446_v48 = vpop.xlane.xlu0 %445 }
 0x6c2   :  { %2056 = vrcp.f32 %v446_v48 }
 0x6c5   :  { %v449_v50 = vpop.xlane.xlu0 %448 }
 0x6c6   :  { %2058 = vrcp.f32 %v449_v50 }
 0x6c9   :  { %v456_v51 = vpop.permute.xlu0 %455 }
 0x6ca   :  { %1892 = vmatpush3.bf16.msra.mxu1 %v456_v51 }
 0x6cb   :  { %1903 = vmatprep.subr.bf16.mxu1 %v2102_v15 }
 0x6cc   :  { %v2057_v52 = vpop.eup %2056 }
 0x6cd   :  { %v452_v54 = vmul.f32 %v2057_v52, %v2053_v38 }
 0x6d0   :  { %v2059_v53 = vpop.eup %2058 }
 0x6d1   :  { %v453_v55 = vmul.f32 %v2059_v53, %v2055_v40 }
 0x6d3   :  { %v454_v56 = vpack.c.bf16 %v453_v55, %v452_v54 }
 0x6d5   :  { %1894 = vmatmul.mubr.msk.bf16.vlgmr.msra.gmra.mrb[8].mxu1 %vm196_vm2, %v454_v56 }
 0x6d6   :  { %1907 = vmatprep.mubr.msk.bf16.mxu1 %vm2103_vm1, %v2102_v15 }
 0x7a8   :  { %v495_v57 = vpop.f32.mrb[8].mxu1 }
 0x7a9   :  { %v1895_v58 = vpop.f32.mrb[9].mxu1 }
 0x7aa   :  { %v498_v59 = vpop.f32.mrb[10].mxu1 }
 0x7ab   :  { %v502_v60 = vpack.c.bf16 %v498_v59, %v495_v57  ;;  %v1896_v61 = vpop.f32.mrb[11].mxu1 }
 0x7ad   :  { %1900 = vmatmul.mubr.msk.bf16.vlgmr.msra.gmra.mrb[12].mxu0 %vm196_vm2, %v502_v60 }
 0x7ae   :  { %1919 = vmatprep.mubr.msk.bf16.mxu0 %vm2103_vm1, %v2102_v15  ;;  %1912 = vmatpush3.bf16.msra.mxu0 %v2022_v42  ;;  %v1739_v42 = vld [vmem:[%s2573_s15] ss:$0 sm:$0xff] }
 0x7af   :  { %1913 = vmatprep.subr.bf16.mxu0 %v2102_v15 }
 0x7b2   :  { %1914 = vmatpush3.bf16.msra.mxu0 %v2023_v43 }
 0x7b3   :  { %1915 = vmatprep.subr.bf16.mxu0 %v2102_v15 }
 0x7b6   :  { %1916 = vmatpush3.bf16.msra.mxu0 %v2024_v44 }
 0x7b7   :  { %1917 = vmatprep.subr.bf16.mxu0 %v2102_v15 }
 0x7ba   :  { %1918 = vmatpush3.bf16.msra.mxu0 %v2025_v46 }
 0x7bb   :  { %1937 = vmatprep.subr.bf16.mxu0 %v2102_v15 }
 0x880   :  { %v546_v0 = vpop.f32.mrb[12].mxu0 }
 0x881   :  { %v553_v2 = vadd.f32 %v546_v0, %v375_v63  ;;  %v1901_v3 = vpop.f32.mrb[13].mxu0 }
 0x882   :  { %v549_v4 = vpop.f32.mrb[14].mxu0 }
 0x883   :  { %v554_v5 = vadd.f32 %v549_v4, %v376_v1  ;;  %v1902_v6 = vpop.f32.mrb[15].mxu0  ;;  %v555_v7 = vadd.f32 %v553_v2, %v2249_v31 }
 0x885   :  { %v559_v8 = vsel %vm73_vm0, %v555_v7, 0.0  ;;  %v556_v9 = vadd.f32 %v554_v5, %v2251_v32  ;;  %v2020_v32 = vld [vmem:[%s2567_s11] sm:$0xff]  }
 0x886   :  { %560 = vadd.xlane.f32.xlu1 %v559_v8  ;;  %1904 = vmatpush3.bf16.msra.mxu1 %v2020_v32 }
 0x887   :  { %v562_v10 = vsel %vm73_vm0, %v556_v9, 0.0  ;;  %1905 = vmatprep.subr.bf16.mxu1 %v2102_v15 }
 0x88a   :  { %563 = vadd.xlane.f32.xlu1 %v562_v10  ;;  %1906 = vmatpush3.bf16.msra.mxu1 %v2021_v21 }
 0x88b   :  { %1923 = vmatprep.subr.bf16.mxu1 %v2102_v15 }
 0x913   :  { %v561_v11 = vpop.xlane.xlu1 %560 }
 0x914   :  { %v565_v12 = vmul.f32 0.03125, %v561_v11 }
 0x916   :  { %v567_v13 = vsub.f32 %v555_v7, %v565_v12 }
 0x917   :  { %v564_v14 = vpop.xlane.xlu1 %563 }
 0x918   :  { %v566_v16 = vmul.f32 0.03125, %v564_v14  ;;  %v569_v17 = vmul.f32 %v567_v13, %v567_v13 }
 0x91a   :  { %v568_v18 = vsub.f32 %v556_v9, %v566_v16  ;;  %v571_v19 = vsel %vm73_vm0, %v569_v17, 0.0  ;;  %v1733_v9 = vld [vmem:[%s2572_s14] ss:$0 sm:$0xff] }
 0x91b   :  { %572 = vadd.xlane.f32.xlu1 %v571_v19 }
 0x91c   :  { %v570_v20 = vmul.f32 %v568_v18, %v568_v18 }
 0x91e   :  { %v574_v31 = vsel %vm73_vm0, %v570_v20, 0.0 }
 0x91f   :  { %575 = vadd.xlane.f32.xlu1 %v574_v31 }
 0x9a8   :  { %v573_v22 = vpop.xlane.xlu1 %572 }
 0x9a9   :  { %v577_v23 = vmul.f32 0.03125, %v573_v22 }
 0x9ab   :  { %v579_v24 = vadd.f32 1e-12, %v577_v23 }
 0x9ac   :  { %v576_v25 = vpop.xlane.xlu1 %575 }
 0x9ad   :  { %2060 = vrsqrt.f32 %v579_v24  ;;  %v578_v26 = vmul.f32 0.03125, %v576_v25 }
 0x9af   :  { %v580_v27 = vadd.f32 1e-12, %v578_v26 }
 0x9b1   :  { %2062 = vrsqrt.f32 %v580_v27 }
 0x9b7   :  { %v2061_v28 = vpop.eup %2060 }
 0x9b8   :  { %v583_v29 = vmul.f32 %v2061_v28, %v567_v13 }
 0x9ba   :  { %v591_v34 = vmul.f32 %v1727_v30, %v583_v29  ;;  %v2026_v29 = vld [vmem:[%s2592_s0 + $0x10] sm:$0xff]  }
 0x9bb   :  { %v2063_v33 = vpop.eup %2062 }
 0x9bc   :  { %v584_v35 = vmul.f32 %v2063_v33, %v568_v18  ;;  %v599_v38 = vadd.f32 %v1728_v36, %v591_v34 }
 0x9be   :  { %v592_v37 = vmul.f32 %v1727_v30, %v584_v35  ;;  %v2027_v30 = vld [vmem:[%s2592_s0 + $0x18] sm:$0xff]  }
 0x9c0   :  { %v600_v39 = vadd.f32 %v1728_v36, %v592_v37 }
 0x9c2   :  { %v601_v40 = vpack.c.bf16 %v600_v39, %v599_v38 }
 0x9c4   :  { %1908 = vmatmul.mubr.msk.bf16.vlgmr.msra.gmra.mrb[12].mxu1 %vm73_vm0, %v601_v40 }
 0x9c5   :  { %1927 = vmatprep.mubr.msk.bf16.mxu1 %vm2103_vm1, %v2102_v15  ;;  %1924 = vmatpush3.bf16.msra.mxu1 %v2026_v29 }
 0x9c6   :  { %1925 = vmatprep.subr.bf16.mxu1 %v2102_v15 }
 0x9c9   :  { %1926 = vmatpush3.bf16.msra.mxu1 %v2027_v30 }
 0x9ca   :  { %1931 = vmatprep.subr.bf16.mxu1 %v2102_v15 }
 0xa97   :  { %v662_v48 = vpop.f32.mrb[12].mxu1 }
 0xa98   :  { %v663_v50 = vadd.f32 %v1729_v47, %v662_v48  ;;  %v1909_v51 = vpop.f32.mrb[13].mxu1 }
 0xa99   :  { %v665_v52 = vpop.f32.mrb[14].mxu1 }
 0xa9a   :  { %v671_v53 = vmul.f32 0.044715, %v663_v50  ;;  %v666_v54 = vadd.f32 %v1729_v47, %v665_v52  ;;  %v1910_v55 = vpop.f32.mrb[15].mxu1  ;;  %v669_v3 = vmul.f32 0.5, %v663_v50  ;;  %v1740_v47 = vld [vmem:[%s2574_s16] ss:$0 sm:$0xff] }
 0xa9c   :  { %v673_v56 = vmul.f32 %v671_v53, %v663_v50  ;;  %v672_v41 = vmul.f32 0.044715, %v666_v54  ;;  %v670_v4 = vmul.f32 0.5, %v666_v54  ;;  %v1746_v53 = vld [vmem:[%s2595_s27 + $0x1] ss:$0 sm:$0xff] }
 0xa9e   :  { %v675_v57 = vmul.f32 %v673_v56, %v663_v50  ;;  %v674_v58 = vmul.f32 %v672_v41, %v666_v54 }
 0xaa0   :  { %v677_v59 = vadd.f32 %v675_v57, %v663_v50  ;;  %v676_v60 = vmul.f32 %v674_v58, %v666_v54 }
 0xaa2   :  { %v679_v61 = vmul.f32 0.7978846, %v677_v59  ;;  %v678_v62 = vadd.f32 %v676_v60, %v666_v54 }
 0xaa4   :  { %2064 = vtanh.f32 %v679_v61  ;;  %v680_v63 = vmul.f32 0.7978846, %v678_v62 }
 0xaa6   :  { %2066 = vtanh.f32 %v680_v63 }
 0xaae   :  { %v2065_v0 = vpop.eup %2064 }
 0xaaf   :  { %v683_v1 = vadd.f32 1.0, %v2065_v0 }
 0xab0   :  { %v2067_v2 = vpop.eup %2066 }
 0xab1   :  { %v684_v5 = vadd.f32 1.0, %v2067_v2  ;;  %v685_v6 = vmul.f32 %v683_v1, %v669_v3 }
 0xab3   :  { %v686_v7 = vmul.f32 %v684_v5, %v670_v4 }
 0xab5   :  { %v687_v8 = vpack.c.bf16 %v686_v7, %v685_v6 }
 0xab7   :  { %1920 = vmatmul.mubr.msk.bf16.vlgmr.msra.gmra.mrb[16].mxu0 %vm727_vm3, %v687_v8 }
 0xab8   :  { %1939 = vmatprep.mubr.msk.bf16.mxu0 %vm2103_vm1, %v2102_v15 }
 0xb8a   :  { %v765_v10 = vpop.f32.mrb[16].mxu0 }
 0xb8b   :  { %v766_v11 = vadd.f32 %v1733_v9, %v765_v10  ;;  %v1921_v12 = vpop.f32.mrb[17].mxu0 }
 0xb8c   :  { %v768_v13 = vpop.f32.mrb[18].mxu0 }
 0xb8d   :  { %v769_v14 = vadd.f32 %v1733_v9, %v768_v13  ;;  %v1922_v16 = vpop.f32.mrb[19].mxu0  ;;  %v772_v17 = vadd.f32 %v766_v11, %v599_v38 }
 0xb8f   :  { %v776_v18 = vsel %vm73_vm0, %v772_v17, 0.0  ;;  %v773_v19 = vadd.f32 %v769_v14, %v600_v39 }
 0xb90   :  { %777 = vadd.xlane.f32.xlu1 %v776_v18 }
 0xb91   :  { %v779_v20 = vsel %vm73_vm0, %v773_v19, 0.0 }
 0xb94   :  { %780 = vadd.xlane.f32.xlu1 %v779_v20 }
 0xc1d   :  { %v778_v31 = vpop.xlane.xlu1 %777 }
 0xc1e   :  { %v782_v32 = vmul.f32 0.03125, %v778_v31 }
 0xc20   :  { %v784_v21 = vsub.f32 %v772_v17, %v782_v32 }
 0xc21   :  { %v781_v22 = vpop.xlane.xlu1 %780 }
 0xc22   :  { %v783_v23 = vmul.f32 0.03125, %v781_v22  ;;  %v786_v24 = vmul.f32 %v784_v21, %v784_v21 }
 0xc24   :  { %v785_v25 = vsub.f32 %v773_v19, %v783_v23  ;;  %v788_v26 = vsel %vm73_vm0, %v786_v24, 0.0 }
 0xc25   :  { %789 = vadd.xlane.f32.xlu0 %v788_v26 }
 0xc26   :  { %v787_v27 = vmul.f32 %v785_v25, %v785_v25 }
 0xc28   :  { %v791_v28 = vsel %vm73_vm0, %v787_v27, 0.0 }
 0xc29   :  { %792 = vadd.xlane.f32.xlu1 %v791_v28  ;;  %v2028_v28 = vld [vmem:[%s2565_s7 + $0x10] sm:$0xff]  }
 0xcb2   :  { %v790_v33 = vpop.xlane.xlu0 %789 }
 0xcb3   :  { %v794_v34 = vmul.f32 0.03125, %v790_v33 }
 0xcb5   :  { %v796_v35 = vadd.f32 1e-12, %v794_v34 }
 0xcb6   :  { %v793_v36 = vpop.xlane.xlu1 %792 }
 0xcb7   :  { %2068 = vrsqrt.f32 %v796_v35  ;;  %v795_v37 = vmul.f32 0.03125, %v793_v36 }
 0xcb9   :  { %v797_v38 = vadd.f32 1e-12, %v795_v37 }
 0xcbb   :  { %2070 = vrsqrt.f32 %v797_v38 }
 0xcc1   :  { %v2069_v39 = vpop.eup %2068 }
 0xcc2   :  { %v800_v40 = vmul.f32 %v2069_v39, %v784_v21 }
 0xcc4   :  { %v808_v44 = vmul.f32 %v1739_v42, %v800_v40 }
 0xcc5   :  { %v2071_v43 = vpop.eup %2070 }
 0xcc6   :  { %v801_v46 = vmul.f32 %v2071_v43, %v785_v25  ;;  %v2397_v50 = vadd.f32 %v1740_v47, %v808_v44 }
 0xcc8   :  { %v809_v48 = vmul.f32 %v1739_v42, %v801_v46 }
 0xcca   :  { %v2399_v51 = vadd.f32 %v1740_v47, %v809_v48 }
 0xccc   :  { %v818_v52 = vpack.c.bf16 %v2399_v51, %v2397_v50 }
 0xcce   :  { %1928 = vmatmul.mubr.msk.bf16.vlgmr.msra.gmra.mrb[16].mxu1 %vm73_vm0, %v818_v52 }
 0xccf   :  { %1933 = vmatprep.mubr.msk.bf16.mxu1 %vm2103_vm1, %v2102_v15 }
 0xda1   :  { %v881_v54 = vpop.f32.mrb[16].mxu1 }
 0xda2   :  { %v1929_v55 = vpop.f32.mrb[17].mxu1  ;;  %v882_v41 = vadd.f32 %v1746_v53, %v881_v54 }
 0xda3   :  { %v884_v56 = vpop.f32.mrb[18].mxu1 }
 0xda4   :  { %v885_v57 = vadd.f32 %v1746_v53, %v884_v56  ;;  %v1930_v58 = vpop.f32.mrb[19].mxu1 }
 0xda6   :  { %v2409_v59 = vpack.c.bf16 %v885_v57, %v882_v41 }
 0xda8   :  { %897 = vrot.lane.b32.xlu1 %v2409_v59, %s2104_s4 }
 0xe1a   :  { %v898_v60 = vpop.permute.xlu1 %897 }
 0xe1b   :  { %v903_v61 = vsel %vm196_vm2, %v898_v60, 0 }
 0xe1c   :  { %1932 = vmatpush3.bf16.xpose.msra.mxu1 %v903_v61 }
 0xe1d   :  { %1943 = vmatprep.subr.bf16.mxu1 %v2102_v15 }
 0xe23   :  { %1934 = vmatmul.mubr.msk.bf16.vlgmr.msra.gmra.mrb[20].mxu1 %vm196_vm2, %v2409_v59 }
 0xe24   :  { %1945 = vmatprep.mubr.msk.bf16.mxu1 %vm2103_vm1, %v2102_v15  ;;  %1944 = vmatpush3.bf16.msra.mxu1 %v2028_v28 }
 0xe25   :  { %1955 = vmatprep.subr.bf16.mxu1 %v2102_v15 }
 0xef6   :  { %v939_v62 = vpop.f32.mrb[20].mxu1 }
 0xef7   :  { %v946_v63 = vmul.f32 0.25, %v939_v62  ;;  %v1935_v0 = vpop.f32.mrb[21].mxu1 }
 0xef8   :  { %v942_v1 = vpop.f32.mrb[22].mxu1 }
 0xef9   :  { %v947_v2 = vmul.f32 0.25, %v942_v1  ;;  %v1936_v3 = vpop.f32.mrb[23].mxu1  ;;  %v948_v4 = vadd.f32 %v946_v63, %v2278_v45 }
 0xefb   :  { %v950_v5 = vsel %vm196_vm2, %v948_v4, -inf  ;;  %v949_v6 = vadd.f32 %v947_v2, %v2283_v49 }
 0xefc   :  { %951 = vmax.xlane.f32.xlu1 %v950_v5 }
 0xefd   :  { %v953_v7 = vsel %vm196_vm2, %v949_v6, -inf }
 0xefe   :  { %954 = vmax.xlane.f32.xlu0 %v953_v7 }
 0xf0d   :  { %1081 = vrot.lane.b32.xlu1 %v2409_v59, %s2105_s28 }
 0xf89   :  { %v952_v8 = vpop.xlane.xlu1 %951 }
 0xf8a   :  { %v956_v9 = vsub.f32 %v948_v4, %v952_v8 }
 0xf8b   :  { %v955_v10 = vpop.xlane.xlu0 %954 }
 0xf8c   :  { %v958_v11 = vmul.f32 1.442695, %v956_v9  ;;  %v957_v12 = vsub.f32 %v949_v6, %v955_v10 }
 0xf8d   :  { %v1082_v24 = vpop.permute.xlu1 %1081 }
 0xf8e   :  { %2072 = vpow2.f32 %v958_v11  ;;  %v960_v13 = vmul.f32 1.442695, %v957_v12  ;;  %v1087_v26 = vsel %vm196_vm2, %v1082_v24, 0  ;;  %v1759_v12 = vld [vmem:[%s2566_s8 + $0x1] ss:$0 sm:$0xff] }
 0xf90   :  { %2074 = vpow2.f32 %v960_v13 }
 0xf98   :  { %v2073_v14 = vpop.eup %2072 }
 0xf99   :  { %v962_v16 = vsel %vm196_vm2, %v2073_v14, 0.0 }
 0xf9a   :  { %v2075_v17 = vpop.eup %2074  ;;  %963 = vadd.xlane.f32.xlu0 %v962_v16 }
 0xf9b   :  { %v965_v18 = vsel %vm196_vm2, %v2075_v17, 0.0 }
 0xf9e   :  { %966 = vadd.xlane.f32.xlu0 %v965_v18 }
 0xfb4   :  { %973 = vrot.lane.b32.xlu0 %v2409_v59, %s2107_s5 }
 0xfb8   :  { %1079 = vrot.lane.b32.xlu0 %v2409_v59, %s2106_s29 }
0x1027   :  { %v964_v19 = vpop.xlane.xlu0 %963 }
0x1028   :  { %2076 = vrcp.f32 %v964_v19 }
0x102b   :  { %v967_v20 = vpop.xlane.xlu0 %966 }
0x102c   :  { %2078 = vrcp.f32 %v967_v20 }
0x102f   :  { %v974_v31 = vpop.permute.xlu0 %973 }
0x1030   :  { %1938 = vmatpush3.bf16.msra.mxu0 %v974_v31 }
0x1031   :  { %1949 = vmatprep.subr.bf16.mxu0 %v2102_v15 }
0x1032   :  { %v2077_v32 = vpop.eup %2076 }
0x1033   :  { %v970_v22 = vmul.f32 %v2077_v32, %v2073_v14  ;;  %v1080_v27 = vpop.permute.xlu0 %1079 }
0x1036   :  { %v2079_v21 = vpop.eup %2078 }
0x1037   :  { %v971_v23 = vmul.f32 %v2079_v21, %v2075_v17 }
0x1039   :  { %v972_v25 = vpack.c.bf16 %v971_v23, %v970_v22 }
0x103b   :  { %1940 = vmatmul.mubr.msk.bf16.vlgmr.msra.gmra.mrb[20].mxu0 %vm196_vm2, %v972_v25 }
0x103c   :  { %1950 = vmatpush3.bf16.xpose.msra.mxu0 %v1087_v26  ;;  %1951 = vmatprep.mubr.msk.bf16.mxu0 %vm2103_vm1, %v2102_v15 }
0x103d   :  { %1961 = vmatprep.subr.bf16.mxu0 %v2102_v15 }
0x1043   :  { %1952 = vmatmul.mubr.msk.bf16.vlgmr.msra.gmra.mrb[24].mxu0 %vm196_vm2, %v1080_v27 }
0x1044   :  { %1963 = vmatprep.mubr.msk.bf16.mxu0 %vm2103_vm1, %v2102_v15 }
0x110e   :  { %v1013_v29 = vpop.f32.mrb[20].mxu0 }
0x110f   :  { %v1941_v30 = vpop.f32.mrb[21].mxu0 }
0x1110   :  { %v1016_v33 = vpop.f32.mrb[22].mxu0 }
0x1111   :  { %v1020_v34 = vpack.c.bf16 %v1016_v33, %v1013_v29  ;;  %v1942_v35 = vpop.f32.mrb[23].mxu0 }
0x1112   :  { %v2031_v35 = vld [vmem:[%s2567_s11 + $0x18] sm:$0xff]  }
0x1113   :  { %1946 = vmatmul.mubr.msk.bf16.vlgmr.msra.gmra.mrb[24].mxu1 %vm196_vm2, %v1020_v34 }
0x1114   :  { %1957 = vmatprep.mubr.msk.bf16.mxu1 %vm2103_vm1, %v2102_v15 }
0x1116   :  { %v1123_v36 = vpop.f32.mrb[24].mxu0 }
0x1117   :  { %v1130_v37 = vmul.f32 0.25, %v1123_v36  ;;  %v1953_v38 = vpop.f32.mrb[25].mxu0 }
0x1118   :  { %v1126_v39 = vpop.f32.mrb[26].mxu0 }
0x1119   :  { %v1131_v40 = vmul.f32 0.25, %v1126_v39  ;;  %v1954_v42 = vpop.f32.mrb[27].mxu0  ;;  %v1132_v43 = vadd.f32 %v1130_v37, %v2278_v45 }
0x111b   :  { %v1134_v44 = vsel %vm196_vm2, %v1132_v43, -inf  ;;  %v1133_v46 = vadd.f32 %v1131_v40, %v2283_v49 }
0x111c   :  { %1135 = vmax.xlane.f32.xlu0 %v1134_v44 }
0x111d   :  { %v1137_v47 = vsel %vm196_vm2, %v1133_v46, -inf }
0x111e   :  { %1138 = vmax.xlane.f32.xlu1 %v1137_v47 }
0x11a9   :  { %v1136_v48 = vpop.xlane.xlu0 %1135 }
0x11aa   :  { %v1140_v52 = vsub.f32 %v1132_v43, %v1136_v48 }
0x11ab   :  { %v1139_v53 = vpop.xlane.xlu1 %1138 }
0x11ac   :  { %v1142_v54 = vmul.f32 1.442695, %v1140_v52  ;;  %v1141_v55 = vsub.f32 %v1133_v46, %v1139_v53  ;;  %v1766_v46 = vld [vmem:[%s2568_s9 + $0x1] ss:$0 sm:$0xff] }
0x11ad   :  { %v1767_v53 = vld [vmem:[%s2569_s10 + $0x1] ss:$0 sm:$0xff] }
0x11ae   :  { %2080 = vpow2.f32 %v1142_v54  ;;  %v1144_v56 = vmul.f32 1.442695, %v1141_v55 }
0x11b0   :  { %2082 = vpow2.f32 %v1144_v56 }
0x11b8   :  { %v2081_v41 = vpop.eup %2080 }
0x11b9   :  { %v1146_v57 = vsel %vm196_vm2, %v2081_v41, 0.0 }
0x11ba   :  { %v2083_v45 = vpop.eup %2082  ;;  %1147 = vadd.xlane.f32.xlu0 %v1146_v57  ;;  %v2032_v57 = vld [vmem:[%s2570_s13 + $0x20] sm:$0xff]  }
0x11bb   :  { %v1149_v58 = vsel %vm196_vm2, %v2083_v45, 0.0 }
0x11be   :  { %1150 = vadd.xlane.f32.xlu0 %v1149_v58  ;;  %v2034_v58 = vld [vmem:[%s2570_s13 + $0x30] sm:$0xff]  }
0x11d4   :  { %1157 = vrot.lane.b32.xlu0 %v2409_v59, %s2108_s25  ;;  %v2029_v59 = vld [vmem:[%s2565_s7 + $0x18] sm:$0xff]  }
0x11d5   :  { %1962 = vmatpush3.bf16.msra.mxu0 %v2029_v59 }
0x11d6   :  { %1975 = vmatprep.subr.bf16.mxu0 %v2102_v15 }
0x11e6   :  { %v1064_v49 = vpop.f32.mrb[24].mxu1 }
0x11e7   :  { %v1947_v60 = vpop.f32.mrb[25].mxu1  ;;  %v1077_v13 = vadd.f32 %v1759_v12, %v1064_v49  ;;  %v2035_v49 = vld [vmem:[%s2570_s13 + $0x38] sm:$0xff]  }
0x11e8   :  { %v1067_v61 = vpop.f32.mrb[26].mxu1  ;;  %v1773_v60 = vld [vmem:[%s2571_s12 + $0x1] ss:$0 sm:$0xff] }
0x11e9   :  { %v1948_v62 = vpop.f32.mrb[27].mxu1  ;;  %v1078_v16 = vadd.f32 %v1759_v12, %v1067_v61 }
0x1247   :  { %v1148_v63 = vpop.xlane.xlu0 %1147 }
0x1248   :  { %2084 = vrcp.f32 %v1148_v63 }
0x124b   :  { %v1151_v0 = vpop.xlane.xlu0 %1150 }
0x124c   :  { %2086 = vrcp.f32 %v1151_v0 }
0x124f   :  { %v1158_v1 = vpop.permute.xlu0 %1157 }
0x1250   :  { %1956 = vmatpush3.bf16.msra.mxu1 %v1158_v1 }
0x1251   :  { %1967 = vmatprep.subr.bf16.mxu1 %v2102_v15 }
0x1252   :  { %v2085_v2 = vpop.eup %2084 }
0x1253   :  { %v1154_v4 = vmul.f32 %v2085_v2, %v2081_v41 }
0x1256   :  { %v2087_v3 = vpop.eup %2086 }
0x1257   :  { %v1155_v5 = vmul.f32 %v2087_v3, %v2083_v45  ;;  %v2033_v45 = vld [vmem:[%s2570_s13 + $0x28] sm:$0xff]  }
0x1259   :  { %v1156_v6 = vpack.c.bf16 %v1155_v5, %v1154_v4 }
0x125b   :  { %1958 = vmatmul.mubr.msk.bf16.vlgmr.msra.gmra.mrb[28].mxu1 %vm196_vm2, %v1156_v6 }
0x125c   :  { %1971 = vmatprep.mubr.msk.bf16.mxu1 %vm2103_vm1, %v2102_v15 }
0x132e   :  { %v1197_v7 = vpop.f32.mrb[28].mxu1 }
0x132f   :  { %v1959_v8 = vpop.f32.mrb[29].mxu1 }
0x1330   :  { %v1200_v9 = vpop.f32.mrb[30].mxu1 }
0x1331   :  { %v1204_v10 = vpack.c.bf16 %v1200_v9, %v1197_v7  ;;  %v1960_v11 = vpop.f32.mrb[31].mxu1 }
0x1333   :  { %1964 = vmatmul.mubr.msk.bf16.vlgmr.msra.gmra.mrb[28].mxu0 %vm196_vm2, %v1204_v10 }
0x1334   :  { %1983 = vmatprep.mubr.msk.bf16.mxu0 %vm2103_vm1, %v2102_v15  ;;  %1976 = vmatpush3.bf16.msra.mxu0 %v2032_v57  ;;  %v1795_v57 = vld [vmem:[%s2574_s16 + $0x1] ss:$0 sm:$0xff] }
0x1335   :  { %1977 = vmatprep.subr.bf16.mxu0 %v2102_v15 }
0x1338   :  { %1978 = vmatpush3.bf16.msra.mxu0 %v2033_v45 }
0x1339   :  { %1979 = vmatprep.subr.bf16.mxu0 %v2102_v15 }
0x133c   :  { %1980 = vmatpush3.bf16.msra.mxu0 %v2034_v58 }
0x133d   :  { %1981 = vmatprep.subr.bf16.mxu0 %v2102_v15 }
0x1340   :  { %1982 = vmatpush3.bf16.msra.mxu0 %v2035_v49 }
0x1341   :  { %2001 = vmatprep.subr.bf16.mxu0 %v2102_v15 }
0x1406   :  { %v1248_v14 = vpop.f32.mrb[28].mxu0 }
0x1407   :  { %v1255_v17 = vadd.f32 %v1248_v14, %v1077_v13  ;;  %v1965_v18 = vpop.f32.mrb[29].mxu0 }
0x1408   :  { %v1251_v19 = vpop.f32.mrb[30].mxu0 }
0x1409   :  { %v1256_v20 = vadd.f32 %v1251_v19, %v1078_v16  ;;  %v1966_v31 = vpop.f32.mrb[31].mxu0  ;;  %v1257_v32 = vadd.f32 %v1255_v17, %v2397_v50 }
0x140b   :  { %v1263_v21 = vsel %vm73_vm0, %v1257_v32, 0.0  ;;  %v1258_v22 = vadd.f32 %v1256_v20, %v2399_v51  ;;  %v2030_v51 = vld [vmem:[%s2567_s11 + $0x10] sm:$0xff]  }
0x140c   :  { %1264 = vadd.xlane.f32.xlu1 %v1263_v21  ;;  %1968 = vmatpush3.bf16.msra.mxu1 %v2030_v51 }
0x140d   :  { %v1266_v23 = vsel %vm73_vm0, %v1258_v22, 0.0  ;;  %1969 = vmatprep.subr.bf16.mxu1 %v2102_v15 }
0x1410   :  { %1267 = vadd.xlane.f32.xlu1 %v1266_v23  ;;  %1970 = vmatpush3.bf16.msra.mxu1 %v2031_v35 }
0x1411   :  { %1987 = vmatprep.subr.bf16.mxu1 %v2102_v15 }
0x1499   :  { %v1265_v24 = vpop.xlane.xlu1 %1264 }
0x149a   :  { %v1269_v25 = vmul.f32 0.03125, %v1265_v24 }
0x149c   :  { %v1271_v26 = vsub.f32 %v1257_v32, %v1269_v25  ;;  %v1786_v32 = vld [vmem:[%s2572_s14 + $0x1] ss:$0 sm:$0xff] }
0x149d   :  { %v1268_v27 = vpop.xlane.xlu1 %1267 }
0x149e   :  { %v1270_v28 = vmul.f32 0.03125, %v1268_v27  ;;  %v1273_v29 = vmul.f32 %v1271_v26, %v1271_v26 }
0x14a0   :  { %v1272_v30 = vsub.f32 %v1258_v22, %v1270_v28  ;;  %v1275_v33 = vsel %vm73_vm0, %v1273_v29, 0.0 }
0x14a1   :  { %1276 = vadd.xlane.f32.xlu1 %v1275_v33 }
0x14a2   :  { %v1274_v34 = vmul.f32 %v1272_v30, %v1272_v30 }
0x14a4   :  { %v1278_v50 = vsel %vm73_vm0, %v1274_v34, 0.0 }
0x14a5   :  { %1279 = vadd.xlane.f32.xlu1 %v1278_v50 }
0x152e   :  { %v1277_v36 = vpop.xlane.xlu1 %1276 }
0x152f   :  { %v1281_v37 = vmul.f32 0.03125, %v1277_v36 }
0x1531   :  { %v1283_v38 = vadd.f32 1e-12, %v1281_v37 }
0x1532   :  { %v1280_v39 = vpop.xlane.xlu1 %1279 }
0x1533   :  { %2088 = vrsqrt.f32 %v1283_v38  ;;  %v1282_v40 = vmul.f32 0.03125, %v1280_v39 }
0x1535   :  { %v1284_v42 = vadd.f32 1e-12, %v1282_v40 }
0x1537   :  { %2090 = vrsqrt.f32 %v1284_v42 }
0x153d   :  { %v2089_v43 = vpop.eup %2088 }
0x153e   :  { %v1287_v44 = vmul.f32 %v2089_v43, %v1271_v26 }
0x1540   :  { %v1295_v48 = vmul.f32 %v1766_v46, %v1287_v44 }
0x1541   :  { %v2091_v47 = vpop.eup %2090 }
0x1542   :  { %v1288_v52 = vmul.f32 %v2091_v47, %v1272_v30  ;;  %v1303_v55 = vadd.f32 %v1767_v53, %v1295_v48 }
0x1544   :  { %v1296_v54 = vmul.f32 %v1766_v46, %v1288_v52 }
0x1546   :  { %v1304_v56 = vadd.f32 %v1767_v53, %v1296_v54  ;;  %v1794_v54 = vld [vmem:[%s2573_s15 + $0x1] ss:$0 sm:$0xff] }
0x1548   :  { %v1305_v41 = vpack.c.bf16 %v1304_v56, %v1303_v55 }
0x154a   :  { %1972 = vmatmul.mubr.msk.bf16.vlgmr.msra.gmra.mrb[32].mxu1 %vm73_vm0, %v1305_v41 }
0x154b   :  { %1989 = vmatprep.mubr.msk.bf16.mxu1 %vm2103_vm1, %v2102_v15 }
0x161d   :  { %v1368_v61 = vpop.f32.mrb[32].mxu1 }
0x161e   :  { %v1369_v62 = vadd.f32 %v1773_v60, %v1368_v61  ;;  %v1973_v63 = vpop.f32.mrb[33].mxu1  ;;  %v1527_v61 = vld [vmem:[%s2576_s2] sm:$0xf] }
0x161f   :  { %v1371_v0 = vpop.f32.mrb[34].mxu1  ;;  %v2037_v63 = vld [vmem:[%s2575_s17 + $0x8] sm:$0xff]  }
0x1620   :  { %v1377_v1 = vmul.f32 0.044715, %v1369_v62  ;;  %v1372_v2 = vadd.f32 %v1773_v60, %v1371_v0  ;;  %v1974_v3 = vpop.f32.mrb[35].mxu1  ;;  %v1375_v16 = vmul.f32 0.5, %v1369_v62 }
0x1622   :  { %v1379_v4 = vmul.f32 %v1377_v1, %v1369_v62  ;;  %v1378_v5 = vmul.f32 0.044715, %v1372_v2  ;;  %v1376_v17 = vmul.f32 0.5, %v1372_v2 }
0x1624   :  { %v1381_v6 = vmul.f32 %v1379_v4, %v1369_v62  ;;  %v1380_v59 = vmul.f32 %v1378_v5, %v1372_v2  ;;  %v2038_v5 = vld [vmem:[%s2577_s19] sm:$0xff]  }
0x1626   :  { %v1383_v7 = vadd.f32 %v1381_v6, %v1369_v62  ;;  %v1382_v8 = vmul.f32 %v1380_v59, %v1372_v2  ;;  %v2036_v62 = vld [vmem:[%s2575_s17] sm:$0xff]   ;;  %v2039_v6 = vld [vmem:[%s2577_s19 + $0x8] sm:$0xff]  }
0x1627   :  { %v1797_v59 = vld [vmem:[%s2578_s18] ss:$0 sm:$0xff] }
0x1628   :  { %v1385_v9 = vmul.f32 0.7978846, %v1383_v7  ;;  %v1384_v10 = vadd.f32 %v1382_v8, %v1372_v2 }
0x162a   :  { %2092 = vtanh.f32 %v1385_v9  ;;  %v1386_v11 = vmul.f32 0.7978846, %v1384_v10 }
0x162c   :  { %2094 = vtanh.f32 %v1386_v11 }
0x1634   :  { %v2093_v12 = vpop.eup %2092 }
0x1635   :  { %v1389_v13 = vadd.f32 1.0, %v2093_v12 }
0x1636   :  { %v2095_v14 = vpop.eup %2094 }
0x1637   :  { %v1390_v18 = vadd.f32 1.0, %v2095_v14  ;;  %v1391_v19 = vmul.f32 %v1389_v13, %v1375_v16 }
0x1639   :  { %v1392_v20 = vmul.f32 %v1390_v18, %v1376_v17 }
0x163b   :  { %v1393_v31 = vpack.c.bf16 %v1392_v20, %v1391_v19 }
0x163d   :  { %1984 = vmatmul.mubr.msk.bf16.vlgmr.msra.gmra.mrb[32].mxu0 %vm727_vm3, %v1393_v31 }
0x163e   :  { %2005 = vmatprep.mubr.msk.bf16.mxu0 %vm2103_vm1, %v2102_v15  ;;  %2002 = vmatpush3.bf16.msra.mxu0 %v2038_v5 }
0x163f   :  { %2003 = vmatprep.subr.bf16.mxu0 %v2102_v15 }
0x1642   :  { %2004 = vmatpush3.bf16.msra.mxu0 %v2039_v6 }
0x1710   :  { %v1472_v21 = vpop.f32.mrb[32].mxu0 }
0x1711   :  { %v1473_v22 = vadd.f32 %v1786_v32, %v1472_v21  ;;  %v1985_v23 = vpop.f32.mrb[33].mxu0 }
0x1712   :  { %v1475_v24 = vpop.f32.mrb[34].mxu0 }
0x1713   :  { %v1476_v25 = vadd.f32 %v1786_v32, %v1475_v24  ;;  %v1986_v26 = vpop.f32.mrb[35].mxu0  ;;  %v1479_v27 = vadd.f32 %v1473_v22, %v1303_v55 }
0x1715   :  { %v1485_v28 = vsel %vm73_vm0, %v1479_v27, 0.0  ;;  %v1480_v29 = vadd.f32 %v1476_v25, %v1304_v56 }
0x1716   :  { %1486 = vadd.xlane.f32.xlu1 %v1485_v28 }
0x1717   :  { %v1488_v30 = vsel %vm73_vm0, %v1480_v29, 0.0 }
0x1718   :  { %1489 = vadd.xlane.f32.xlu0 %v1488_v30 }
0x17a3   :  { %v1487_v33 = vpop.xlane.xlu1 %1486 }
0x17a4   :  { %v1491_v34 = vmul.f32 0.03125, %v1487_v33 }
0x17a5   :  { %v1490_v50 = vpop.xlane.xlu0 %1489 }
0x17a6   :  { %v1493_v51 = vsub.f32 %v1479_v27, %v1491_v34  ;;  %v1492_v35 = vmul.f32 0.03125, %v1490_v50 }
0x17a8   :  { %v1494_v36 = vsub.f32 %v1480_v29, %v1492_v35  ;;  %v1495_v37 = vmul.f32 %v1493_v51, %v1493_v51 }
0x17aa   :  { %v1497_v38 = vsel %vm73_vm0, %v1495_v37, 0.0  ;;  %v1496_v39 = vmul.f32 %v1494_v36, %v1494_v36 }
0x17ab   :  { %1498 = vadd.xlane.f32.xlu1 %v1497_v38 }
0x17ac   :  { %v1500_v40 = vsel %vm73_vm0, %v1496_v39, 0.0 }
0x17af   :  { %1501 = vadd.xlane.f32.xlu1 %v1500_v40 }
0x1838   :  { %v1499_v42 = vpop.xlane.xlu1 %1498 }
0x1839   :  { %v1503_v43 = vmul.f32 0.03125, %v1499_v42 }
0x183b   :  { %v1505_v44 = vadd.f32 1e-12, %v1503_v43 }
0x183c   :  { %v1502_v46 = vpop.xlane.xlu1 %1501 }
0x183d   :  { %2096 = vrsqrt.f32 %v1505_v44  ;;  %v1504_v47 = vmul.f32 0.03125, %v1502_v46 }
0x183f   :  { %v1506_v48 = vadd.f32 1e-12, %v1504_v47 }
0x1841   :  { %2098 = vrsqrt.f32 %v1506_v48 }
0x1847   :  { %v2097_v52 = vpop.eup %2096 }
0x1848   :  { %v1509_v53 = vmul.f32 %v2097_v52, %v1493_v51 }
0x184a   :  { %v1517_v41 = vmul.f32 %v1794_v54, %v1509_v53 }
0x184b   :  { %v2099_v55 = vpop.eup %2098 }
0x184c   :  { %v1510_v56 = vmul.f32 %v2099_v55, %v1494_v36  ;;  %v1525_v58 = vadd.f32 %v1795_v57, %v1517_v41 }
0x184e   :  { %v1518_v45 = vmul.f32 %v1794_v54, %v1510_v56 }
0x1850   :  { %v1526_v49 = vadd.f32 %v1795_v57, %v1518_v45 }
0x1852   :  { %v1528_v60 = vpack.c.bf16 %v1526_v49, %v1525_v58 }
0x1854   :  { %1988 = vmatpush3.bf16.msra.mxu1 %v1528_v60 }
0x1855   :  { %1993 = vmatprep.subr.bf16.mxu1 %v2102_v15 }
0x1857   :  { %1990 = vmatmul.mubr.msk.bf16.vlgmr.msra.gmra.mrb[36].mxu1 %vm196_vm2, %v1527_v61 }
0x1858   :  { %1994 = vmatpush3.bf16.msra.mxu1 %v2036_v62  ;;  %1997 = vmatprep.mubr.msk.bf16.mxu1 %vm2103_vm1, %v2102_v15 }
0x1859   :  { %1995 = vmatprep.subr.bf16.mxu1 %v2102_v15  ;;  %v1801_v15 = vld [vmem:[%s2579_s20] ss:$0 sm:$0xff] }
0x185c   :  { %1996 = vmatpush3.bf16.msra.mxu1 %v2037_v63 }
0x192a   :  { %v1566_v0 = vpop.f32.mrb[36].mxu1 }
0x192b   :  { %v1572_v1 = vpack.c.bf16 %v1566_v0, %v1566_v0  ;;  %v1991_v2 = vpop.f32.mrb[37].mxu1 }
0x192c   :  { %v1569_v3 = vpop.f32.mrb[38].mxu1 }
0x192d   :  { %v1992_v4 = vpop.f32.mrb[39].mxu1  ;;  %1998 = vmatmul.mubr.msk.bf16.vlgmr.msra.gmra.mrb[40].mxu1 %vm73_vm0, %v1572_v1 }
0x1a00   :  { %v1633_v7 = vpop.f32.mrb[40].mxu1 }
0x1a01   :  { %v1634_v8 = vadd.f32 %v1797_v59, %v1633_v7  ;;  %v1999_v9 = vpop.f32.mrb[41].mxu1 }
0x1a02   :  { %v1636_v10 = vpop.f32.mrb[42].mxu1 }
0x1a03   :  { %2100 = vtanh.f32 %v1634_v8  ;;  %v2000_v11 = vpop.f32.mrb[43].mxu1 }
0x1a0d   :  { %v2101_v12 = vpop.eup %2100 }
0x1a0e   :  { %v1640_v13 = vpack.c.bf16 %v2101_v12, %v2101_v12 }
0x1a10   :  { %2006 = vmatmul.mubr.msk.bf16.vlgmr.msra.gmra.mrb[36].mxu0 %vm73_vm0, %v1640_v13 }
0x1ae3   :  { %v1701_v14 = vpop.f32.mrb[36].mxu0 }
0x1ae4   :  { %v1702_v16 = vadd.f32 %v1801_v15, %v1701_v14  ;;  %v2007_v17 = vpop.f32.mrb[37].mxu0 }
0x1ae5   :  { %v1704_v18 = vpop.f32.mrb[38].mxu0 }
0x1ae6   :  { %1707 = vst [vmem:[%s2580_s21] sm:$0xff] %v1702_v16  ;;  %v2008_v19 = vpop.f32.mrb[39].mxu0 }

</bundles_post_ra>
